<compile_context>
chip_gen: v7x
topology: tpu7x:2x2x1
jax: 0.10.0
libtpu: 0.0.40
codegen_flags: <defaults>
</compile_context>

<pallas_src>
import jax
import jax.numpy as jnp
from jax.experimental import pallas as pl
from jax.experimental.pallas import tpu as pltpu


def _round_up(x, m):
    return (x + m - 1) // m * m


# ----------------------------------------------------------------------------
# Kernel 1: serial LSTM recurrence over a Tc-step chunk of precomputed gates.
#   grid = (batch_tiles, T/Tc); h/c carried in persistent VMEM scratch.
# ----------------------------------------------------------------------------
def lstm_recurrence_kernel(gx_ref, whh_ref, h_out_ref, h_sc, c_sc):
    """gx_ref:    (Tc, BT, 4*Hp) bf16 -- x@W_ih^T + (b_ih+b_hh), gate-padded (streamed)
       whh_ref:   (Hp, 4*Hp)     bf16 -- W_hh^T, gate-padded (resident across chunks)
       h_out_ref: (Tc, BT, Hp)   bf16 -- hidden state per timestep
       h_sc,c_sc: (BT, Hp)       f32  -- persistent recurrent state (scratch)
    """
    Tc = gx_ref.shape[0]
    Hp = h_out_ref.shape[2]

    # New batch tile starts (t-chunk 0) -> reset recurrent state.
    @pl.when(pl.program_id(1) == 0)
    def _():
        h_sc[...] = jnp.zeros_like(h_sc)
        c_sc[...] = jnp.zeros_like(c_sc)

    def step(t, _):
        h_prev = h_sc[...]                                        # f32 (BT, Hp)
        c_prev = c_sc[...]
        # recurrent matmul: bf16 operands, f32 accumulation on the MXU
        gates = gx_ref[t].astype(jnp.float32) + jnp.dot(
            h_prev.astype(jnp.bfloat16), whh_ref[...],
            preferred_element_type=jnp.float32)
        # gate slabs are lane-aligned (each gate occupies a full Hp = 128k slab)
        i_g = jax.nn.sigmoid(gates[:, 0 * Hp:1 * Hp])
        f_g = jax.nn.sigmoid(gates[:, 1 * Hp:2 * Hp])
        g_g = jnp.tanh(gates[:, 2 * Hp:3 * Hp])
        o_g = jax.nn.sigmoid(gates[:, 3 * Hp:4 * Hp])
        c_new = f_g * c_prev + i_g * g_g                          # f32 elementwise
        h_new = o_g * jnp.tanh(c_new)
        h_sc[...] = h_new
        c_sc[...] = c_new
        h_out_ref[t] = h_new.astype(jnp.bfloat16)                 # half-width writeback
        return 0

    # Bounded unroll: at most Tc (= 8) steps per grid block (no full-T unroll).
    jax.lax.fori_loop(0, Tc, step, 0, unroll=True)


# ----------------------------------------------------------------------------
# Kernel 2: hoisted hidden2word projection, embarrassingly-parallel tiled matmul.
# ----------------------------------------------------------------------------
def proj_kernel(h_ref, w_ref, b_ref, o_ref):
    o_ref[...] = (jnp.dot(h_ref[...], w_ref[...],
                          preferred_element_type=jnp.float32) + b_ref[...])


@jax.jit
def decoder_rnn_forward(features, captions, embed_table,
                        w_ih, w_hh, b_ih, b_hh, w_out, b_out):
    """Semantics of DecoderRNN.forward(features, captions).

    features: (B, E) float32
    captions: (B, Tcap) int32
    returns:  (B, Tcap, V) float32   (LSTM seq len = 1 + (Tcap - 1) = Tcap)
    """
    TC_STEPS = 8   # time steps per recurrence grid block

    # --- glue (plain JAX): embedding gather + concat of image feature as step 0 ---
    emb = jnp.take(embed_table, captions[:, :-1], axis=0)         # (B, Tcap-1, E)
    x = jnp.concatenate([features[:, None, :], emb], axis=1)      # (B, T, E)
    x_t = jnp.transpose(x, (1, 0, 2)).astype(jnp.float32)         # (T, B, E) time-major

    T, B, E = x_t.shape
    H = w_hh.shape[1]
    V = w_out.shape[0]

    Tc = min(TC_STEPS, T)
    Tp = _round_up(T, Tc)       # padded time (streamed in Tc-step chunks)
    Bp = _round_up(B, 8)        # sublane alignment
    Hp = _round_up(H, 128)      # lane-aligned gate slabs
    Vp = _round_up(V, 128)      # lane-dense logits stores

    # batch-parallel tiles: 2 when Bp >= 16 (v7x has 2 TCs; harmless on v5e/v6e)
    n_bt = 2 if (Bp >= 16 and (Bp // 2) % 8 == 0) else 1
    BT = Bp // n_bt

    # --- pad + transpose weights; each gate occupies a full Hp-wide slab ---
    def pad_gate_cols(w):                       # (K, 4H) -> (K, 4Hp)
        k = w.shape[0]
        w4 = jnp.pad(w.reshape(k, 4, H), ((0, 0), (0, 0), (0, Hp - H)))
        return w4.reshape(k, 4 * Hp)

    wih_p = pad_gate_cols(w_ih.T.astype(jnp.float32)).astype(jnp.bfloat16)       # (E, 4Hp)
    whh_p = pad_gate_cols(jnp.pad(w_hh.T.astype(jnp.float32),
                                  ((0, Hp - H), (0, 0)))).astype(jnp.bfloat16)   # (Hp, 4Hp)
    b_p = pad_gate_cols((b_ih + b_hh)[None, :].astype(jnp.float32))              # (1, 4Hp) f32

    wout_p = jnp.pad(w_out.T.astype(jnp.float32),
                     ((0, Hp - H), (0, Vp - V))).astype(jnp.bfloat16)            # (Hp, Vp)
    bout_p = jnp.pad(b_out[None, :].astype(jnp.float32),
                     ((0, 0), (0, Vp - V)))                                      # (1, Vp)

    # --- hoisted input projection: ONE (Tp*Bp, E) @ (E, 4Hp) matmul, stored bf16 ---
    x_pad = jnp.pad(x_t, ((0, Tp - T), (0, Bp - B), (0, 0)))                     # (Tp, Bp, E)
    gates_x = (jnp.dot(x_pad.reshape(Tp * Bp, E).astype(jnp.bfloat16), wih_p,
                       preferred_element_type=jnp.float32)
               + b_p).astype(jnp.bfloat16).reshape(Tp, Bp, 4 * Hp)               # bf16

    # --- recurrence: stream gate chunks over T, h/c in persistent VMEM scratch ---
    # TODO(synk): sweep pipeline_mode=pl.Buffered(2..3) on the gx in_spec at production
    # sizes; default 2-deep buffering is used here to keep lowering maximally portable.
    h_all = pl.pallas_call(
        lstm_recurrence_kernel,
        out_shape=jax.ShapeDtypeStruct((Tp, Bp, Hp), jnp.bfloat16),
        grid_spec=pltpu.PrefetchScalarGridSpec(
            num_scalar_prefetch=0,
            grid=(n_bt, Tp // Tc),
            in_specs=[
                pl.BlockSpec((Tc, BT, 4 * Hp), lambda b, i: (i, b, 0)),  # streamed gates
                pl.BlockSpec((Hp, 4 * Hp), lambda b, i: (0, 0)),         # W_hh^T resident
            ],
            out_specs=pl.BlockSpec((Tc, BT, Hp), lambda b, i: (i, b, 0)),
            scratch_shapes=[pltpu.VMEM((BT, Hp), jnp.float32),   # h carry
                            pltpu.VMEM((BT, Hp), jnp.float32)],  # c carry
        ),
        compiler_params=pltpu.CompilerParams(
            dimension_semantics=("parallel", "arbitrary")),   # parallel in B, serial in T
    )(gates_x, whh_p)

    # --- hoisted hidden2word projection: parallel tiled Pallas matmul ---
    Rp = Tp * Bp
    h_flat = h_all.reshape(Rp, Hp)                 # bf16, already in padded layout

    TM = 512                                       # grow tiles toward HBM roofline;
    while Rp % TM != 0:                            # clamp to a divisor of the padded rows
        TM //= 2
    TN = 512
    while Vp % TN != 0:                            # keep TN a multiple of 128
        TN //= 2

    logits_p = pl.pallas_call(
        proj_kernel,
        out_shape=jax.ShapeDtypeStruct((Rp, Vp), jnp.float32),
        grid_spec=pltpu.PrefetchScalarGridSpec(
            num_scalar_prefetch=0,
            grid=(Rp // TM, Vp // TN),
            in_specs=[
                pl.BlockSpec((TM, Hp), lambda i, j: (i, 0)),
                pl.BlockSpec((Hp, TN), lambda i, j: (0, j)),
                pl.BlockSpec((1, TN), lambda i, j: (0, j)),
            ],
            out_specs=pl.BlockSpec((TM, TN), lambda i, j: (i, j)),
        ),
        compiler_params=pltpu.CompilerParams(
            dimension_semantics=("parallel", "parallel")),
    )(h_flat, wout_p, bout_p)

    # unpad and return batch-first (B, T, V)
    # TODO(synk): at production vocab sizes, write the projection output batch-major
    # (3-D grid over (b, t, v) tiles) or fold this transpose into the consumer to avoid
    # an extra full-logits HBM round trip.
    logits = logits_p.reshape(Tp, Bp, Vp)[:T, :B, :V]
    return jnp.transpose(logits, (1, 0, 2))


def reference_forward(features, captions, embed_table,
                      w_ih, w_hh, b_ih, b_hh, w_out, b_out):
    """Pure-JAX f32 reference replicating torch.nn.LSTM (num_layers=1, batch_first)."""
    emb = jnp.take(embed_table, captions[:, :-1], axis=0)
    x = jnp.concatenate([features[:, None, :], emb], axis=1)     # (B, T, E)
    B, T, _ = x.shape
    H = w_hh.shape[1]

    def step(carry, x_t):
        h, c = carry
        gates = x_t @ w_ih.T + b_ih + h @ w_hh.T + b_hh
        i = jax.nn.sigmoid(gates[:, 0 * H:1 * H])
        f = jax.nn.sigmoid(gates[:, 1 * H:2 * H])
        g = jnp.tanh(gates[:, 2 * H:3 * H])
        o = jax.nn.sigmoid(gates[:, 3 * H:4 * H])
        c = f * c + i * g
        h = o * jnp.tanh(c)
        return (h, c), h

    h0 = jnp.zeros((B, H), jnp.float32)
    c0 = jnp.zeros((B, H), jnp.float32)
    _, hs = jax.lax.scan(step, (h0, c0), jnp.transpose(x, (1, 0, 2)))
    hs = jnp.transpose(hs, (1, 0, 2))                            # (B, T, H)
    return hs @ w_out.T + b_out


if __name__ == "__main__":
    # small, TPU-friendly sizes
    embed_size, hidden_size, vocab_size = 32, 32, 64
    B, Tcap = 2, 8                                    # LSTM sequence length = 8

    key = jax.random.PRNGKey(0)
    ks = jax.random.split(key, 9)
    scale = 0.1
    embed_table = scale * jax.random.normal(ks[0], (vocab_size, embed_size), jnp.float32)
    w_ih = scale * jax.random.normal(ks[1], (4 * hidden_size, embed_size), jnp.float32)
    w_hh = scale * jax.random.normal(ks[2], (4 * hidden_size, hidden_size), jnp.float32)
    b_ih = scale * jax.random.normal(ks[3], (4 * hidden_size,), jnp.float32)
    b_hh = scale * jax.random.normal(ks[4], (4 * hidden_size,), jnp.float32)
    w_out = scale * jax.random.normal(ks[5], (vocab_size, hidden_size), jnp.float32)
    b_out = scale * jax.random.normal(ks[6], (vocab_size,), jnp.float32)

    features = jax.random.normal(ks[7], (B, embed_size), jnp.float32)
    captions = jax.random.randint(ks[8], (B, Tcap), 0, vocab_size, jnp.int32)

    out = decoder_rnn_forward(features, captions, embed_table,
                              w_ih, w_hh, b_ih, b_hh, w_out, b_out)
    out = jax.block_until_ready(out)
    assert out.shape == (B, Tcap, vocab_size), out.shape

    ref = reference_forward(features, captions, embed_table,
                            w_ih, w_hh, b_ih, b_hh, w_out, b_out)
    ref = jax.block_until_ready(ref)
    # bf16 MXU operands + bf16-streamed gx/h with f32 accumulation/gate math
    # -> loosened tolerance vs the all-f32 reference
    assert jnp.allclose(out, ref, rtol=3e-2, atol=3e-2), \
        float(jnp.max(jnp.abs(out - ref)))

    print("KERNEL_OK")
</pallas_src>

<mosaic_0001>
module attributes {stable_mosaic.version = 11 : i64} {
  func.func @proj_kernel(%arg0: i32, %arg1: i32, %arg2: memref<64x128xbf16, #tpu.memory_space<vmem>>, %arg3: memref<128x128xbf16, #tpu.memory_space<vmem>>, %arg4: memref<1x128xf32, #tpu.memory_space<vmem>>, %arg5: memref<64x128xf32, #tpu.memory_space<vmem>>) attributes {dimension_semantics = [#tpu.dimension_semantics<parallel>, #tpu.dimension_semantics<parallel>], iteration_bounds = array<i64: 1, 1>, scalar_prefetch = 0 : i64, scratch_operands = 0 : i64, tpu.core_type = #tpu.core_type<tc>, window_params = [{transform_indices = @transform_0, window_bounds = array<i64: 64, 128>}, {transform_indices = @transform_1, window_bounds = array<i64: 128, 128>}, {transform_indices = @transform_2, window_bounds = array<i64: 1, 128>}, {transform_indices = @transform_3, window_bounds = array<i64: 64, 128>}]} {
    %c0 = arith.constant 0 : index
    %c0_0 = arith.constant 0 : index
    %0 = vector.load %arg2[%c0, %c0_0] : memref<64x128xbf16, #tpu.memory_space<vmem>>, vector<64x128xbf16>
    %c0_1 = arith.constant 0 : index
    %c0_2 = arith.constant 0 : index
    %1 = vector.load %arg3[%c0_1, %c0_2] : memref<128x128xbf16, #tpu.memory_space<vmem>>, vector<128x128xbf16>
    %cst = arith.constant dense<0.000000e+00> : vector<64x128xf32>
    %2 = tpu.matmul %0, %1, %cst {dimension_numbers = #tpu.dot_dimension_numbers<[1], [0], [0], [1], [0, 0, 1, 1], [], []>} : vector<64x128xbf16>, vector<128x128xbf16>, vector<64x128xf32> -> vector<64x128xf32>
    %c0_3 = arith.constant 0 : index
    %c0_4 = arith.constant 0 : index
    %3 = vector.load %arg4[%c0_3, %c0_4] : memref<1x128xf32, #tpu.memory_space<vmem>>, vector<1x128xf32>
    %4 = vector.broadcast %3 : vector<1x128xf32> to vector<64x128xf32>
    %5 = arith.addf %2, %4 : vector<64x128xf32>
    %c0_5 = arith.constant 0 : index
    %c0_6 = arith.constant 0 : index
    %6 = vector.load %arg5[%c0_5, %c0_6] : memref<64x128xf32, #tpu.memory_space<vmem>>, vector<64x128xf32>
    tpu.vector_store %arg5[%c0_5, %c0_6], %5 {strides = array<i32>} : memref<64x128xf32, #tpu.memory_space<vmem>>, vector<64x128xf32>,
    return
  }
  func.func @transform_0(%arg0: i32, %arg1: i32) -> (i32, i32) {
    %c0_i32 = arith.constant 0 : i32
    %c0_i32_0 = arith.constant 0 : i32
    return %arg0, %c0_i32 : i32, i32
  }
  func.func @transform_1(%arg0: i32, %arg1: i32) -> (i32, i32) {
    %c0_i32 = arith.constant 0 : i32
    %c0_i32_0 = arith.constant 0 : i32
    return %c0_i32, %arg1 : i32, i32
  }
  func.func @transform_2(%arg0: i32, %arg1: i32) -> (i32, i32) {
    %c0_i32 = arith.constant 0 : i32
    %c0_i32_0 = arith.constant 0 : i32
    return %c0_i32, %arg1 : i32, i32
  }
  func.func @transform_3(%arg0: i32, %arg1: i32) -> (i32, i32) {
    %c0_i32 = arith.constant 0 : i32
    return %arg0, %arg1 : i32, i32
  }
}

module attributes {stable_mosaic.version = 11 : i64} {
  func.func @lstm_recurrence_kernel(%arg0: i32, %arg1: i32, %arg2: memref<8x8x512xbf16, #tpu.memory_space<vmem>>, %arg3: memref<128x512xbf16, #tpu.memory_space<vmem>>, %arg4: memref<8x8x128xbf16, #tpu.memory_space<vmem>>, %arg5: memref<8x128xf32, #tpu.memory_space<vmem>>, %arg6: memref<8x128xf32, #tpu.memory_space<vmem>>) attributes {dimension_semantics = [#tpu.dimension_semantics<parallel>, #tpu.dimension_semantics<arbitrary>], iteration_bounds = array<i64: 1, 1>, scalar_prefetch = 0 : i64, scratch_operands = 2 : i64, tpu.core_type = #tpu.core_type<tc>, window_params = [{transform_indices = @transform_0, window_bounds = array<i64: 8, 8, 512>}, {pipeline_mode = #tpu.pipeline_mode<synchronous>, transform_indices = @transform_1, window_bounds = array<i64: 128, 512>}, {transform_indices = @transform_2, window_bounds = array<i64: 8, 8, 128>}]} {
    %c0_i32 = arith.constant 0 : i32
    %0 = arith.cmpi eq, %arg1, %c0_i32 : i32
    %1 = arith.extui %0 : i1 to i32
    %c0_i32_0 = arith.constant 0 : i32
    %2 = arith.cmpi ne, %1, %c0_i32_0 : i32
    scf.if %2 {
      %cst_144 = arith.constant 0.000000e+00 : f32
      %339 = vector.broadcast %cst_144 : f32 to vector<8x128xf32>
      %c0_145 = arith.constant 0 : index
      %c0_146 = arith.constant 0 : index
      %340 = vector.load %arg5[%c0_145, %c0_146] : memref<8x128xf32, #tpu.memory_space<vmem>>, vector<8x128xf32>
      tpu.vector_store %arg5[%c0_145, %c0_146], %339 {strides = array<i32>} : memref<8x128xf32, #tpu.memory_space<vmem>>, vector<8x128xf32>,
      %cst_147 = arith.constant 0.000000e+00 : f32
      %341 = vector.broadcast %cst_147 : f32 to vector<8x128xf32>
      %c0_148 = arith.constant 0 : index
      %c0_149 = arith.constant 0 : index
      %342 = vector.load %arg6[%c0_148, %c0_149] : memref<8x128xf32, #tpu.memory_space<vmem>>, vector<8x128xf32>
      tpu.vector_store %arg6[%c0_148, %c0_149], %341 {strides = array<i32>} : memref<8x128xf32, #tpu.memory_space<vmem>>, vector<8x128xf32>,
    } else {
    }
    %c0_i32_1 = arith.constant 0 : i32
    %c0 = arith.constant 0 : index
    %c0_2 = arith.constant 0 : index
    %3 = vector.load %arg5[%c0, %c0_2] : memref<8x128xf32, #tpu.memory_space<vmem>>, vector<8x128xf32>
    %c0_3 = arith.constant 0 : index
    %c0_4 = arith.constant 0 : index
    %4 = vector.load %arg6[%c0_3, %c0_4] : memref<8x128xf32, #tpu.memory_space<vmem>>, vector<8x128xf32>
    %5 = arith.index_cast %c0_i32_1 : i32 to index
    %c0_5 = arith.constant 0 : index
    %c0_6 = arith.constant 0 : index
    %6 = vector.load %arg2[%5, %c0_5, %c0_6] : memref<8x8x512xbf16, #tpu.memory_space<vmem>>, vector<1x8x512xbf16>
    %7 = vector.shape_cast %6 : vector<1x8x512xbf16> to vector<8x512xbf16>
    %8 = arith.extf %7 : vector<8x512xbf16> to vector<8x512xf32>
    %9 = arith.truncf %3 : vector<8x128xf32> to vector<8x128xbf16>
    %c0_7 = arith.constant 0 : index
    %c0_8 = arith.constant 0 : index
    %10 = vector.load %arg3[%c0_7, %c0_8] : memref<128x512xbf16, #tpu.memory_space<vmem>>, vector<128x512xbf16>
    %cst = arith.constant dense<0.000000e+00> : vector<8x512xf32>
    %11 = tpu.matmul %9, %10, %cst {dimension_numbers = #tpu.dot_dimension_numbers<[1], [0], [0], [1], [0, 0, 1, 1], [], []>} : vector<8x128xbf16>, vector<128x512xbf16>, vector<8x512xf32> -> vector<8x512xf32>
    %12 = arith.addf %8, %11 : vector<8x512xf32>
    %13 = vector.extract_strided_slice %12 {offsets = [0, 0], sizes = [8, 128], strides = [1, 1]} : vector<8x512xf32> to vector<8x128xf32>
    %14 = arith.negf %13 : vector<8x128xf32>
    %15 = math.exp %14 : vector<8x128xf32>
    %cst_9 = arith.constant 1.000000e+00 : f32
    %16 = vector.broadcast %cst_9 : f32 to vector<8x128xf32>
    %17 = arith.addf %16, %15 : vector<8x128xf32>
    %18 = arith.divf %16, %17 : vector<8x128xf32>
    %19 = vector.extract_strided_slice %12 {offsets = [0, 128], sizes = [8, 128], strides = [1, 1]} : vector<8x512xf32> to vector<8x128xf32>
    %20 = arith.negf %19 : vector<8x128xf32>
    %21 = math.exp %20 : vector<8x128xf32>
    %cst_10 = arith.constant 1.000000e+00 : f32
    %22 = vector.broadcast %cst_10 : f32 to vector<8x128xf32>
    %23 = arith.addf %22, %21 : vector<8x128xf32>
    %24 = arith.divf %22, %23 : vector<8x128xf32>
    %25 = vector.extract_strided_slice %12 {offsets = [0, 256], sizes = [8, 128], strides = [1, 1]} : vector<8x512xf32> to vector<8x128xf32>
    %26 = math.tanh %25 : vector<8x128xf32>
    %27 = vector.extract_strided_slice %12 {offsets = [0, 384], sizes = [8, 128], strides = [1, 1]} : vector<8x512xf32> to vector<8x128xf32>
    %28 = arith.negf %27 : vector<8x128xf32>
    %29 = math.exp %28 : vector<8x128xf32>
    %cst_11 = arith.constant 1.000000e+00 : f32
    %30 = vector.broadcast %cst_11 : f32 to vector<8x128xf32>
    %31 = arith.addf %30, %29 : vector<8x128xf32>
    %32 = arith.divf %30, %31 : vector<8x128xf32>
    %33 = arith.mulf %24, %4 : vector<8x128xf32>
    %34 = arith.mulf %18, %26 : vector<8x128xf32>
    %35 = arith.addf %33, %34 : vector<8x128xf32>
    %36 = math.tanh %35 : vector<8x128xf32>
    %37 = arith.mulf %32, %36 : vector<8x128xf32>
    %c0_12 = arith.constant 0 : index
    %c0_13 = arith.constant 0 : index
    %38 = vector.load %arg5[%c0_12, %c0_13] : memref<8x128xf32, #tpu.memory_space<vmem>>, vector<8x128xf32>
    tpu.vector_store %arg5[%c0_12, %c0_13], %37 {strides = array<i32>} : memref<8x128xf32, #tpu.memory_space<vmem>>, vector<8x128xf32>,
    %c0_14 = arith.constant 0 : index
    %c0_15 = arith.constant 0 : index
    %39 = vector.load %arg6[%c0_14, %c0_15] : memref<8x128xf32, #tpu.memory_space<vmem>>, vector<8x128xf32>
    tpu.vector_store %arg6[%c0_14, %c0_15], %35 {strides = array<i32>} : memref<8x128xf32, #tpu.memory_space<vmem>>, vector<8x128xf32>,
    %40 = arith.truncf %37 : vector<8x128xf32> to vector<8x128xbf16>
    %41 = arith.index_cast %c0_i32_1 : i32 to index
    %c0_16 = arith.constant 0 : index
    %c0_17 = arith.constant 0 : index
    %42 = vector.load %arg4[%41, %c0_16, %c0_17] : memref<8x8x128xbf16, #tpu.memory_space<vmem>>, vector<1x8x128xbf16>
    %43 = vector.shape_cast %42 : vector<1x8x128xbf16> to vector<8x128xbf16>
    %44 = vector.shape_cast %40 : vector<8x128xbf16> to vector<1x8x128xbf16>
    tpu.vector_store %arg4[%41, %c0_16, %c0_17], %44 {strides = array<i32>} : memref<8x8x128xbf16, #tpu.memory_space<vmem>>, vector<1x8x128xbf16>,
    %c1_i32 = arith.constant 1 : i32
    %c0_18 = arith.constant 0 : index
    %c0_19 = arith.constant 0 : index
    %45 = vector.load %arg5[%c0_18, %c0_19] : memref<8x128xf32, #tpu.memory_space<vmem>>, vector<8x128xf32>
    %c0_20 = arith.constant 0 : index
    %c0_21 = arith.constant 0 : index
    %46 = vector.load %arg6[%c0_20, %c0_21] : memref<8x128xf32, #tpu.memory_space<vmem>>, vector<8x128xf32>
    %47 = arith.index_cast %c1_i32 : i32 to index
    %c0_22 = arith.constant 0 : index
    %c0_23 = arith.constant 0 : index
    %48 = vector.load %arg2[%47, %c0_22, %c0_23] : memref<8x8x512xbf16, #tpu.memory_space<vmem>>, vector<1x8x512xbf16>
    %49 = vector.shape_cast %48 : vector<1x8x512xbf16> to vector<8x512xbf16>
    %50 = arith.extf %49 : vector<8x512xbf16> to vector<8x512xf32>
    %51 = arith.truncf %45 : vector<8x128xf32> to vector<8x128xbf16>
    %c0_24 = arith.constant 0 : index
    %c0_25 = arith.constant 0 : index
    %52 = vector.load %arg3[%c0_24, %c0_25] : memref<128x512xbf16, #tpu.memory_space<vmem>>, vector<128x512xbf16>
    %cst_26 = arith.constant dense<0.000000e+00> : vector<8x512xf32>
    %53 = tpu.matmul %51, %52, %cst_26 {dimension_numbers = #tpu.dot_dimension_numbers<[1], [0], [0], [1], [0, 0, 1, 1], [], []>} : vector<8x128xbf16>, vector<128x512xbf16>, vector<8x512xf32> -> vector<8x512xf32>
    %54 = arith.addf %50, %53 : vector<8x512xf32>
    %55 = vector.extract_strided_slice %54 {offsets = [0, 0], sizes = [8, 128], strides = [1, 1]} : vector<8x512xf32> to vector<8x128xf32>
    %56 = arith.negf %55 : vector<8x128xf32>
    %57 = math.exp %56 : vector<8x128xf32>
    %cst_27 = arith.constant 1.000000e+00 : f32
    %58 = vector.broadcast %cst_27 : f32 to vector<8x128xf32>
    %59 = arith.addf %58, %57 : vector<8x128xf32>
    %60 = arith.divf %58, %59 : vector<8x128xf32>
    %61 = vector.extract_strided_slice %54 {offsets = [0, 128], sizes = [8, 128], strides = [1, 1]} : vector<8x512xf32> to vector<8x128xf32>
    %62 = arith.negf %61 : vector<8x128xf32>
    %63 = math.exp %62 : vector<8x128xf32>
    %cst_28 = arith.constant 1.000000e+00 : f32
    %64 = vector.broadcast %cst_28 : f32 to vector<8x128xf32>
    %65 = arith.addf %64, %63 : vector<8x128xf32>
    %66 = arith.divf %64, %65 : vector<8x128xf32>
    %67 = vector.extract_strided_slice %54 {offsets = [0, 256], sizes = [8, 128], strides = [1, 1]} : vector<8x512xf32> to vector<8x128xf32>
    %68 = math.tanh %67 : vector<8x128xf32>
    %69 = vector.extract_strided_slice %54 {offsets = [0, 384], sizes = [8, 128], strides = [1, 1]} : vector<8x512xf32> to vector<8x128xf32>
    %70 = arith.negf %69 : vector<8x128xf32>
    %71 = math.exp %70 : vector<8x128xf32>
    %cst_29 = arith.constant 1.000000e+00 : f32
    %72 = vector.broadcast %cst_29 : f32 to vector<8x128xf32>
    %73 = arith.addf %72, %71 : vector<8x128xf32>
    %74 = arith.divf %72, %73 : vector<8x128xf32>
    %75 = arith.mulf %66, %46 : vector<8x128xf32>
    %76 = arith.mulf %60, %68 : vector<8x128xf32>
    %77 = arith.addf %75, %76 : vector<8x128xf32>
    %78 = math.tanh %77 : vector<8x128xf32>
    %79 = arith.mulf %74, %78 : vector<8x128xf32>
    %c0_30 = arith.constant 0 : index
    %c0_31 = arith.constant 0 : index
    %80 = vector.load %arg5[%c0_30, %c0_31] : memref<8x128xf32, #tpu.memory_space<vmem>>, vector<8x128xf32>
    tpu.vector_store %arg5[%c0_30, %c0_31], %79 {strides = array<i32>} : memref<8x128xf32, #tpu.memory_space<vmem>>, vector<8x128xf32>,
    %c0_32 = arith.constant 0 : index
    %c0_33 = arith.constant 0 : index
    %81 = vector.load %arg6[%c0_32, %c0_33] : memref<8x128xf32, #tpu.memory_space<vmem>>, vector<8x128xf32>
    tpu.vector_store %arg6[%c0_32, %c0_33], %77 {strides = array<i32>} : memref<8x128xf32, #tpu.memory_space<vmem>>, vector<8x128xf32>,
    %82 = arith.truncf %79 : vector<8x128xf32> to vector<8x128xbf16>
    %83 = arith.index_cast %c1_i32 : i32 to index
    %c0_34 = arith.constant 0 : index
    %c0_35 = arith.constant 0 : index
    %84 = vector.load %arg4[%83, %c0_34, %c0_35] : memref<8x8x128xbf16, #tpu.memory_space<vmem>>, vector<1x8x128xbf16>
    %85 = vector.shape_cast %84 : vector<1x8x128xbf16> to vector<8x128xbf16>
    %86 = vector.shape_cast %82 : vector<8x128xbf16> to vector<1x8x128xbf16>
    tpu.vector_store %arg4[%83, %c0_34, %c0_35], %86 {strides = array<i32>} : memref<8x8x128xbf16, #tpu.memory_space<vmem>>, vector<1x8x128xbf16>,
    %c2_i32 = arith.constant 2 : i32
    %c0_36 = arith.constant 0 : index
    %c0_37 = arith.constant 0 : index
    %87 = vector.load %arg5[%c0_36, %c0_37] : memref<8x128xf32, #tpu.memory_space<vmem>>, vector<8x128xf32>
    %c0_38 = arith.constant 0 : index
    %c0_39 = arith.constant 0 : index
    %88 = vector.load %arg6[%c0_38, %c0_39] : memref<8x128xf32, #tpu.memory_space<vmem>>, vector<8x128xf32>
    %89 = arith.index_cast %c2_i32 : i32 to index
    %c0_40 = arith.constant 0 : index
    %c0_41 = arith.constant 0 : index
    %90 = vector.load %arg2[%89, %c0_40, %c0_41] : memref<8x8x512xbf16, #tpu.memory_space<vmem>>, vector<1x8x512xbf16>
    %91 = vector.shape_cast %90 : vector<1x8x512xbf16> to vector<8x512xbf16>
    %92 = arith.extf %91 : vector<8x512xbf16> to vector<8x512xf32>
    %93 = arith.truncf %87 : vector<8x128xf32> to vector<8x128xbf16>
    %c0_42 = arith.constant 0 : index
    %c0_43 = arith.constant 0 : index
    %94 = vector.load %arg3[%c0_42, %c0_43] : memref<128x512xbf16, #tpu.memory_space<vmem>>, vector<128x512xbf16>
    %cst_44 = arith.constant dense<0.000000e+00> : vector<8x512xf32>
    %95 = tpu.matmul %93, %94, %cst_44 {dimension_numbers = #tpu.dot_dimension_numbers<[1], [0], [0], [1], [0, 0, 1, 1], [], []>} : vector<8x128xbf16>, vector<128x512xbf16>, vector<8x512xf32> -> vector<8x512xf32>
    %96 = arith.addf %92, %95 : vector<8x512xf32>
    %97 = vector.extract_strided_slice %96 {offsets = [0, 0], sizes = [8, 128], strides = [1, 1]} : vector<8x512xf32> to vector<8x128xf32>
    %98 = arith.negf %97 : vector<8x128xf32>
    %99 = math.exp %98 : vector<8x128xf32>
    %cst_45 = arith.constant 1.000000e+00 : f32
    %100 = vector.broadcast %cst_45 : f32 to vector<8x128xf32>
    %101 = arith.addf %100, %99 : vector<8x128xf32>
    %102 = arith.divf %100, %101 : vector<8x128xf32>
    %103 = vector.extract_strided_slice %96 {offsets = [0, 128], sizes = [8, 128], strides = [1, 1]} : vector<8x512xf32> to vector<8x128xf32>
    %104 = arith.negf %103 : vector<8x128xf32>
    %105 = math.exp %104 : vector<8x128xf32>
    %cst_46 = arith.constant 1.000000e+00 : f32
    %106 = vector.broadcast %cst_46 : f32 to vector<8x128xf32>
    %107 = arith.addf %106, %105 : vector<8x128xf32>
    %108 = arith.divf %106, %107 : vector<8x128xf32>
    %109 = vector.extract_strided_slice %96 {offsets = [0, 256], sizes = [8, 128], strides = [1, 1]} : vector<8x512xf32> to vector<8x128xf32>
    %110 = math.tanh %109 : vector<8x128xf32>
    %111 = vector.extract_strided_slice %96 {offsets = [0, 384], sizes = [8, 128], strides = [1, 1]} : vector<8x512xf32> to vector<8x128xf32>
    %112 = arith.negf %111 : vector<8x128xf32>
    %113 = math.exp %112 : vector<8x128xf32>
    %cst_47 = arith.constant 1.000000e+00 : f32
    %114 = vector.broadcast %cst_47 : f32 to vector<8x128xf32>
    %115 = arith.addf %114, %113 : vector<8x128xf32>
    %116 = arith.divf %114, %115 : vector<8x128xf32>
    %117 = arith.mulf %108, %88 : vector<8x128xf32>
    %118 = arith.mulf %102, %110 : vector<8x128xf32>
    %119 = arith.addf %117, %118 : vector<8x128xf32>
    %120 = math.tanh %119 : vector<8x128xf32>
    %121 = arith.mulf %116, %120 : vector<8x128xf32>
    %c0_48 = arith.constant 0 : index
    %c0_49 = arith.constant 0 : index
    %122 = vector.load %arg5[%c0_48, %c0_49] : memref<8x128xf32, #tpu.memory_space<vmem>>, vector<8x128xf32>
    tpu.vector_store %arg5[%c0_48, %c0_49], %121 {strides = array<i32>} : memref<8x128xf32, #tpu.memory_space<vmem>>, vector<8x128xf32>,
    %c0_50 = arith.constant 0 : index
    %c0_51 = arith.constant 0 : index
    %123 = vector.load %arg6[%c0_50, %c0_51] : memref<8x128xf32, #tpu.memory_space<vmem>>, vector<8x128xf32>
    tpu.vector_store %arg6[%c0_50, %c0_51], %119 {strides = array<i32>} : memref<8x128xf32, #tpu.memory_space<vmem>>, vector<8x128xf32>,
    %124 = arith.truncf %121 : vector<8x128xf32> to vector<8x128xbf16>
    %125 = arith.index_cast %c2_i32 : i32 to index
    %c0_52 = arith.constant 0 : index
    %c0_53 = arith.constant 0 : index
    %126 = vector.load %arg4[%125, %c0_52, %c0_53] : memref<8x8x128xbf16, #tpu.memory_space<vmem>>, vector<1x8x128xbf16>
    %127 = vector.shape_cast %126 : vector<1x8x128xbf16> to vector<8x128xbf16>
    %128 = vector.shape_cast %124 : vector<8x128xbf16> to vector<1x8x128xbf16>
    tpu.vector_store %arg4[%125, %c0_52, %c0_53], %128 {strides = array<i32>} : memref<8x8x128xbf16, #tpu.memory_space<vmem>>, vector<1x8x128xbf16>,
    %c3_i32 = arith.constant 3 : i32
    %c0_54 = arith.constant 0 : index
    %c0_55 = arith.constant 0 : index
    %129 = vector.load %arg5[%c0_54, %c0_55] : memref<8x128xf32, #tpu.memory_space<vmem>>, vector<8x128xf32>
    %c0_56 = arith.constant 0 : index
    %c0_57 = arith.constant 0 : index
    %130 = vector.load %arg6[%c0_56, %c0_57] : memref<8x128xf32, #tpu.memory_space<vmem>>, vector<8x128xf32>
    %131 = arith.index_cast %c3_i32 : i32 to index
    %c0_58 = arith.constant 0 : index
    %c0_59 = arith.constant 0 : index
    %132 = vector.load %arg2[%131, %c0_58, %c0_59] : memref<8x8x512xbf16, #tpu.memory_space<vmem>>, vector<1x8x512xbf16>
    %133 = vector.shape_cast %132 : vector<1x8x512xbf16> to vector<8x512xbf16>
    %134 = arith.extf %133 : vector<8x512xbf16> to vector<8x512xf32>
    %135 = arith.truncf %129 : vector<8x128xf32> to vector<8x128xbf16>
    %c0_60 = arith.constant 0 : index
    %c0_61 = arith.constant 0 : index
    %136 = vector.load %arg3[%c0_60, %c0_61] : memref<128x512xbf16, #tpu.memory_space<vmem>>, vector<128x512xbf16>
    %cst_62 = arith.constant dense<0.000000e+00> : vector<8x512xf32>
    %137 = tpu.matmul %135, %136, %cst_62 {dimension_numbers = #tpu.dot_dimension_numbers<[1], [0], [0], [1], [0, 0, 1, 1], [], []>} : vector<8x128xbf16>, vector<128x512xbf16>, vector<8x512xf32> -> vector<8x512xf32>
    %138 = arith.addf %134, %137 : vector<8x512xf32>
    %139 = vector.extract_strided_slice %138 {offsets = [0, 0], sizes = [8, 128], strides = [1, 1]} : vector<8x512xf32> to vector<8x128xf32>
    %140 = arith.negf %139 : vector<8x128xf32>
    %141 = math.exp %140 : vector<8x128xf32>
    %cst_63 = arith.constant 1.000000e+00 : f32
    %142 = vector.broadcast %cst_63 : f32 to vector<8x128xf32>
    %143 = arith.addf %142, %141 : vector<8x128xf32>
    %144 = arith.divf %142, %143 : vector<8x128xf32>
    %145 = vector.extract_strided_slice %138 {offsets = [0, 128], sizes = [8, 128], strides = [1, 1]} : vector<8x512xf32> to vector<8x128xf32>
    %146 = arith.negf %145 : vector<8x128xf32>
    %147 = math.exp %146 : vector<8x128xf32>
    %cst_64 = arith.constant 1.000000e+00 : f32
    %148 = vector.broadcast %cst_64 : f32 to vector<8x128xf32>
    %149 = arith.addf %148, %147 : vector<8x128xf32>
    %150 = arith.divf %148, %149 : vector<8x128xf32>
    %151 = vector.extract_strided_slice %138 {offsets = [0, 256], sizes = [8, 128], strides = [1, 1]} : vector<8x512xf32> to vector<8x128xf32>
    %152 = math.tanh %151 : vector<8x128xf32>
    %153 = vector.extract_strided_slice %138 {offsets = [0, 384], sizes = [8, 128], strides = [1, 1]} : vector<8x512xf32> to vector<8x128xf32>
    %154 = arith.negf %153 : vector<8x128xf32>
    %155 = math.exp %154 : vector<8x128xf32>
    %cst_65 = arith.constant 1.000000e+00 : f32
    %156 = vector.broadcast %cst_65 : f32 to vector<8x128xf32>
    %157 = arith.addf %156, %155 : vector<8x128xf32>
    %158 = arith.divf %156, %157 : vector<8x128xf32>
    %159 = arith.mulf %150, %130 : vector<8x128xf32>
    %160 = arith.mulf %144, %152 : vector<8x128xf32>
    %161 = arith.addf %159, %160 : vector<8x128xf32>
    %162 = math.tanh %161 : vector<8x128xf32>
    %163 = arith.mulf %158, %162 : vector<8x128xf32>
    %c0_66 = arith.constant 0 : index
    %c0_67 = arith.constant 0 : index
    %164 = vector.load %arg5[%c0_66, %c0_67] : memref<8x128xf32, #tpu.memory_space<vmem>>, vector<8x128xf32>
    tpu.vector_store %arg5[%c0_66, %c0_67], %163 {strides = array<i32>} : memref<8x128xf32, #tpu.memory_space<vmem>>, vector<8x128xf32>,
    %c0_68 = arith.constant 0 : index
    %c0_69 = arith.constant 0 : index
    %165 = vector.load %arg6[%c0_68, %c0_69] : memref<8x128xf32, #tpu.memory_space<vmem>>, vector<8x128xf32>
    tpu.vector_store %arg6[%c0_68, %c0_69], %161 {strides = array<i32>} : memref<8x128xf32, #tpu.memory_space<vmem>>, vector<8x128xf32>,
    %166 = arith.truncf %163 : vector<8x128xf32> to vector<8x128xbf16>
    %167 = arith.index_cast %c3_i32 : i32 to index
    %c0_70 = arith.constant 0 : index
    %c0_71 = arith.constant 0 : index
    %168 = vector.load %arg4[%167, %c0_70, %c0_71] : memref<8x8x128xbf16, #tpu.memory_space<vmem>>, vector<1x8x128xbf16>
    %169 = vector.shape_cast %168 : vector<1x8x128xbf16> to vector<8x128xbf16>
    %170 = vector.shape_cast %166 : vector<8x128xbf16> to vector<1x8x128xbf16>
    tpu.vector_store %arg4[%167, %c0_70, %c0_71], %170 {strides = array<i32>} : memref<8x8x128xbf16, #tpu.memory_space<vmem>>, vector<1x8x128xbf16>,
    %c4_i32 = arith.constant 4 : i32
    %c0_72 = arith.constant 0 : index
    %c0_73 = arith.constant 0 : index
    %171 = vector.load %arg5[%c0_72, %c0_73] : memref<8x128xf32, #tpu.memory_space<vmem>>, vector<8x128xf32>
    %c0_74 = arith.constant 0 : index
    %c0_75 = arith.constant 0 : index
    %172 = vector.load %arg6[%c0_74, %c0_75] : memref<8x128xf32, #tpu.memory_space<vmem>>, vector<8x128xf32>
    %173 = arith.index_cast %c4_i32 : i32 to index
    %c0_76 = arith.constant 0 : index
    %c0_77 = arith.constant 0 : index
    %174 = vector.load %arg2[%173, %c0_76, %c0_77] : memref<8x8x512xbf16, #tpu.memory_space<vmem>>, vector<1x8x512xbf16>
    %175 = vector.shape_cast %174 : vector<1x8x512xbf16> to vector<8x512xbf16>
    %176 = arith.extf %175 : vector<8x512xbf16> to vector<8x512xf32>
    %177 = arith.truncf %171 : vector<8x128xf32> to vector<8x128xbf16>
    %c0_78 = arith.constant 0 : index
    %c0_79 = arith.constant 0 : index
    %178 = vector.load %arg3[%c0_78, %c0_79] : memref<128x512xbf16, #tpu.memory_space<vmem>>, vector<128x512xbf16>
    %cst_80 = arith.constant dense<0.000000e+00> : vector<8x512xf32>
    %179 = tpu.matmul %177, %178, %cst_80 {dimension_numbers = #tpu.dot_dimension_numbers<[1], [0], [0], [1], [0, 0, 1, 1], [], []>} : vector<8x128xbf16>, vector<128x512xbf16>, vector<8x512xf32> -> vector<8x512xf32>
    %180 = arith.addf %176, %179 : vector<8x512xf32>
    %181 = vector.extract_strided_slice %180 {offsets = [0, 0], sizes = [8, 128], strides = [1, 1]} : vector<8x512xf32> to vector<8x128xf32>
    %182 = arith.negf %181 : vector<8x128xf32>
    %183 = math.exp %182 : vector<8x128xf32>
    %cst_81 = arith.constant 1.000000e+00 : f32
    %184 = vector.broadcast %cst_81 : f32 to vector<8x128xf32>
    %185 = arith.addf %184, %183 : vector<8x128xf32>
    %186 = arith.divf %184, %185 : vector<8x128xf32>
    %187 = vector.extract_strided_slice %180 {offsets = [0, 128], sizes = [8, 128], strides = [1, 1]} : vector<8x512xf32> to vector<8x128xf32>
    %188 = arith.negf %187 : vector<8x128xf32>
    %189 = math.exp %188 : vector<8x128xf32>
    %cst_82 = arith.constant 1.000000e+00 : f32
    %190 = vector.broadcast %cst_82 : f32 to vector<8x128xf32>
    %191 = arith.addf %190, %189 : vector<8x128xf32>
    %192 = arith.divf %190, %191 : vector<8x128xf32>
    %193 = vector.extract_strided_slice %180 {offsets = [0, 256], sizes = [8, 128], strides = [1, 1]} : vector<8x512xf32> to vector<8x128xf32>
    %194 = math.tanh %193 : vector<8x128xf32>
    %195 = vector.extract_strided_slice %180 {offsets = [0, 384], sizes = [8, 128], strides = [1, 1]} : vector<8x512xf32> to vector<8x128xf32>
    %196 = arith.negf %195 : vector<8x128xf32>
    %197 = math.exp %196 : vector<8x128xf32>
    %cst_83 = arith.constant 1.000000e+00 : f32
    %198 = vector.broadcast %cst_83 : f32 to vector<8x128xf32>
    %199 = arith.addf %198, %197 : vector<8x128xf32>
    %200 = arith.divf %198, %199 : vector<8x128xf32>
    %201 = arith.mulf %192, %172 : vector<8x128xf32>
    %202 = arith.mulf %186, %194 : vector<8x128xf32>
    %203 = arith.addf %201, %202 : vector<8x128xf32>
    %204 = math.tanh %203 : vector<8x128xf32>
    %205 = arith.mulf %200, %204 : vector<8x128xf32>
    %c0_84 = arith.constant 0 : index
    %c0_85 = arith.constant 0 : index
    %206 = vector.load %arg5[%c0_84, %c0_85] : memref<8x128xf32, #tpu.memory_space<vmem>>, vector<8x128xf32>
    tpu.vector_store %arg5[%c0_84, %c0_85], %205 {strides = array<i32>} : memref<8x128xf32, #tpu.memory_space<vmem>>, vector<8x128xf32>,
    %c0_86 = arith.constant 0 : index
    %c0_87 = arith.constant 0 : index
    %207 = vector.load %arg6[%c0_86, %c0_87] : memref<8x128xf32, #tpu.memory_space<vmem>>, vector<8x128xf32>
    tpu.vector_store %arg6[%c0_86, %c0_87], %203 {strides = array<i32>} : memref<8x128xf32, #tpu.memory_space<vmem>>, vector<8x128xf32>,
    %208 = arith.truncf %205 : vector<8x128xf32> to vector<8x128xbf16>
    %209 = arith.index_cast %c4_i32 : i32 to index
    %c0_88 = arith.constant 0 : index
    %c0_89 = arith.constant 0 : index
    %210 = vector.load %arg4[%209, %c0_88, %c0_89] : memref<8x8x128xbf16, #tpu.memory_space<vmem>>, vector<1x8x128xbf16>
    %211 = vector.shape_cast %210 : vector<1x8x128xbf16> to vector<8x128xbf16>
    %212 = vector.shape_cast %208 : vector<8x128xbf16> to vector<1x8x128xbf16>
    tpu.vector_store %arg4[%209, %c0_88, %c0_89], %212 {strides = array<i32>} : memref<8x8x128xbf16, #tpu.memory_space<vmem>>, vector<1x8x128xbf16>,
    %c5_i32 = arith.constant 5 : i32
    %c0_90 = arith.constant 0 : index
    %c0_91 = arith.constant 0 : index
    %213 = vector.load %arg5[%c0_90, %c0_91] : memref<8x128xf32, #tpu.memory_space<vmem>>, vector<8x128xf32>
    %c0_92 = arith.constant 0 : index
    %c0_93 = arith.constant 0 : index
    %214 = vector.load %arg6[%c0_92, %c0_93] : memref<8x128xf32, #tpu.memory_space<vmem>>, vector<8x128xf32>
    %215 = arith.index_cast %c5_i32 : i32 to index
    %c0_94 = arith.constant 0 : index
    %c0_95 = arith.constant 0 : index
    %216 = vector.load %arg2[%215, %c0_94, %c0_95] : memref<8x8x512xbf16, #tpu.memory_space<vmem>>, vector<1x8x512xbf16>
    %217 = vector.shape_cast %216 : vector<1x8x512xbf16> to vector<8x512xbf16>
    %218 = arith.extf %217 : vector<8x512xbf16> to vector<8x512xf32>
    %219 = arith.truncf %213 : vector<8x128xf32> to vector<8x128xbf16>
    %c0_96 = arith.constant 0 : index
    %c0_97 = arith.constant 0 : index
    %220 = vector.load %arg3[%c0_96, %c0_97] : memref<128x512xbf16, #tpu.memory_space<vmem>>, vector<128x512xbf16>
    %cst_98 = arith.constant dense<0.000000e+00> : vector<8x512xf32>
    %221 = tpu.matmul %219, %220, %cst_98 {dimension_numbers = #tpu.dot_dimension_numbers<[1], [0], [0], [1], [0, 0, 1, 1], [], []>} : vector<8x128xbf16>, vector<128x512xbf16>, vector<8x512xf32> -> vector<8x512xf32>
    %222 = arith.addf %218, %221 : vector<8x512xf32>
    %223 = vector.extract_strided_slice %222 {offsets = [0, 0], sizes = [8, 128], strides = [1, 1]} : vector<8x512xf32> to vector<8x128xf32>
    %224 = arith.negf %223 : vector<8x128xf32>
    %225 = math.exp %224 : vector<8x128xf32>
    %cst_99 = arith.constant 1.000000e+00 : f32
    %226 = vector.broadcast %cst_99 : f32 to vector<8x128xf32>
    %227 = arith.addf %226, %225 : vector<8x128xf32>
    %228 = arith.divf %226, %227 : vector<8x128xf32>
    %229 = vector.extract_strided_slice %222 {offsets = [0, 128], sizes = [8, 128], strides = [1, 1]} : vector<8x512xf32> to vector<8x128xf32>
    %230 = arith.negf %229 : vector<8x128xf32>
    %231 = math.exp %230 : vector<8x128xf32>
    %cst_100 = arith.constant 1.000000e+00 : f32
    %232 = vector.broadcast %cst_100 : f32 to vector<8x128xf32>
    %233 = arith.addf %232, %231 : vector<8x128xf32>
    %234 = arith.divf %232, %233 : vector<8x128xf32>
    %235 = vector.extract_strided_slice %222 {offsets = [0, 256], sizes = [8, 128], strides = [1, 1]} : vector<8x512xf32> to vector<8x128xf32>
    %236 = math.tanh %235 : vector<8x128xf32>
    %237 = vector.extract_strided_slice %222 {offsets = [0, 384], sizes = [8, 128], strides = [1, 1]} : vector<8x512xf32> to vector<8x128xf32>
    %238 = arith.negf %237 : vector<8x128xf32>
    %239 = math.exp %238 : vector<8x128xf32>
    %cst_101 = arith.constant 1.000000e+00 : f32
    %240 = vector.broadcast %cst_101 : f32 to vector<8x128xf32>
    %241 = arith.addf %240, %239 : vector<8x128xf32>
    %242 = arith.divf %240, %241 : vector<8x128xf32>
    %243 = arith.mulf %234, %214 : vector<8x128xf32>
    %244 = arith.mulf %228, %236 : vector<8x128xf32>
    %245 = arith.addf %243, %244 : vector<8x128xf32>
    %246 = math.tanh %245 : vector<8x128xf32>
    %247 = arith.mulf %242, %246 : vector<8x128xf32>
    %c0_102 = arith.constant 0 : index
    %c0_103 = arith.constant 0 : index
    %248 = vector.load %arg5[%c0_102, %c0_103] : memref<8x128xf32, #tpu.memory_space<vmem>>, vector<8x128xf32>
    tpu.vector_store %arg5[%c0_102, %c0_103], %247 {strides = array<i32>} : memref<8x128xf32, #tpu.memory_space<vmem>>, vector<8x128xf32>,
    %c0_104 = arith.constant 0 : index
    %c0_105 = arith.constant 0 : index
    %249 = vector.load %arg6[%c0_104, %c0_105] : memref<8x128xf32, #tpu.memory_space<vmem>>, vector<8x128xf32>
    tpu.vector_store %arg6[%c0_104, %c0_105], %245 {strides = array<i32>} : memref<8x128xf32, #tpu.memory_space<vmem>>, vector<8x128xf32>,
    %250 = arith.truncf %247 : vector<8x128xf32> to vector<8x128xbf16>
    %251 = arith.index_cast %c5_i32 : i32 to index
    %c0_106 = arith.constant 0 : index
    %c0_107 = arith.constant 0 : index
    %252 = vector.load %arg4[%251, %c0_106, %c0_107] : memref<8x8x128xbf16, #tpu.memory_space<vmem>>, vector<1x8x128xbf16>
    %253 = vector.shape_cast %252 : vector<1x8x128xbf16> to vector<8x128xbf16>
    %254 = vector.shape_cast %250 : vector<8x128xbf16> to vector<1x8x128xbf16>
    tpu.vector_store %arg4[%251, %c0_106, %c0_107], %254 {strides = array<i32>} : memref<8x8x128xbf16, #tpu.memory_space<vmem>>, vector<1x8x128xbf16>,
    %c6_i32 = arith.constant 6 : i32
    %c0_108 = arith.constant 0 : index
    %c0_109 = arith.constant 0 : index
    %255 = vector.load %arg5[%c0_108, %c0_109] : memref<8x128xf32, #tpu.memory_space<vmem>>, vector<8x128xf32>
    %c0_110 = arith.constant 0 : index
    %c0_111 = arith.constant 0 : index
    %256 = vector.load %arg6[%c0_110, %c0_111] : memref<8x128xf32, #tpu.memory_space<vmem>>, vector<8x128xf32>
    %257 = arith.index_cast %c6_i32 : i32 to index
    %c0_112 = arith.constant 0 : index
    %c0_113 = arith.constant 0 : index
    %258 = vector.load %arg2[%257, %c0_112, %c0_113] : memref<8x8x512xbf16, #tpu.memory_space<vmem>>, vector<1x8x512xbf16>
    %259 = vector.shape_cast %258 : vector<1x8x512xbf16> to vector<8x512xbf16>
    %260 = arith.extf %259 : vector<8x512xbf16> to vector<8x512xf32>
    %261 = arith.truncf %255 : vector<8x128xf32> to vector<8x128xbf16>
    %c0_114 = arith.constant 0 : index
    %c0_115 = arith.constant 0 : index
    %262 = vector.load %arg3[%c0_114, %c0_115] : memref<128x512xbf16, #tpu.memory_space<vmem>>, vector<128x512xbf16>
    %cst_116 = arith.constant dense<0.000000e+00> : vector<8x512xf32>
    %263 = tpu.matmul %261, %262, %cst_116 {dimension_numbers = #tpu.dot_dimension_numbers<[1], [0], [0], [1], [0, 0, 1, 1], [], []>} : vector<8x128xbf16>, vector<128x512xbf16>, vector<8x512xf32> -> vector<8x512xf32>
    %264 = arith.addf %260, %263 : vector<8x512xf32>
    %265 = vector.extract_strided_slice %264 {offsets = [0, 0], sizes = [8, 128], strides = [1, 1]} : vector<8x512xf32> to vector<8x128xf32>
    %266 = arith.negf %265 : vector<8x128xf32>
    %267 = math.exp %266 : vector<8x128xf32>
    %cst_117 = arith.constant 1.000000e+00 : f32
    %268 = vector.broadcast %cst_117 : f32 to vector<8x128xf32>
    %269 = arith.addf %268, %267 : vector<8x128xf32>
    %270 = arith.divf %268, %269 : vector<8x128xf32>
    %271 = vector.extract_strided_slice %264 {offsets = [0, 128], sizes = [8, 128], strides = [1, 1]} : vector<8x512xf32> to vector<8x128xf32>
    %272 = arith.negf %271 : vector<8x128xf32>
    %273 = math.exp %272 : vector<8x128xf32>
    %cst_118 = arith.constant 1.000000e+00 : f32
    %274 = vector.broadcast %cst_118 : f32 to vector<8x128xf32>
    %275 = arith.addf %274, %273 : vector<8x128xf32>
    %276 = arith.divf %274, %275 : vector<8x128xf32>
    %277 = vector.extract_strided_slice %264 {offsets = [0, 256], sizes = [8, 128], strides = [1, 1]} : vector<8x512xf32> to vector<8x128xf32>
    %278 = math.tanh %277 : vector<8x128xf32>
    %279 = vector.extract_strided_slice %264 {offsets = [0, 384], sizes = [8, 128], strides = [1, 1]} : vector<8x512xf32> to vector<8x128xf32>
    %280 = arith.negf %279 : vector<8x128xf32>
    %281 = math.exp %280 : vector<8x128xf32>
    %cst_119 = arith.constant 1.000000e+00 : f32
    %282 = vector.broadcast %cst_119 : f32 to vector<8x128xf32>
    %283 = arith.addf %282, %281 : vector<8x128xf32>
    %284 = arith.divf %282, %283 : vector<8x128xf32>
    %285 = arith.mulf %276, %256 : vector<8x128xf32>
    %286 = arith.mulf %270, %278 : vector<8x128xf32>
    %287 = arith.addf %285, %286 : vector<8x128xf32>
    %288 = math.tanh %287 : vector<8x128xf32>
    %289 = arith.mulf %284, %288 : vector<8x128xf32>
    %c0_120 = arith.constant 0 : index
    %c0_121 = arith.constant 0 : index
    %290 = vector.load %arg5[%c0_120, %c0_121] : memref<8x128xf32, #tpu.memory_space<vmem>>, vector<8x128xf32>
    tpu.vector_store %arg5[%c0_120, %c0_121], %289 {strides = array<i32>} : memref<8x128xf32, #tpu.memory_space<vmem>>, vector<8x128xf32>,
    %c0_122 = arith.constant 0 : index
    %c0_123 = arith.constant 0 : index
    %291 = vector.load %arg6[%c0_122, %c0_123] : memref<8x128xf32, #tpu.memory_space<vmem>>, vector<8x128xf32>
    tpu.vector_store %arg6[%c0_122, %c0_123], %287 {strides = array<i32>} : memref<8x128xf32, #tpu.memory_space<vmem>>, vector<8x128xf32>,
    %292 = arith.truncf %289 : vector<8x128xf32> to vector<8x128xbf16>
    %293 = arith.index_cast %c6_i32 : i32 to index
    %c0_124 = arith.constant 0 : index
    %c0_125 = arith.constant 0 : index
    %294 = vector.load %arg4[%293, %c0_124, %c0_125] : memref<8x8x128xbf16, #tpu.memory_space<vmem>>, vector<1x8x128xbf16>
    %295 = vector.shape_cast %294 : vector<1x8x128xbf16> to vector<8x128xbf16>
    %296 = vector.shape_cast %292 : vector<8x128xbf16> to vector<1x8x128xbf16>
    tpu.vector_store %arg4[%293, %c0_124, %c0_125], %296 {strides = array<i32>} : memref<8x8x128xbf16, #tpu.memory_space<vmem>>, vector<1x8x128xbf16>,
    %c7_i32 = arith.constant 7 : i32
    %c0_126 = arith.constant 0 : index
    %c0_127 = arith.constant 0 : index
    %297 = vector.load %arg5[%c0_126, %c0_127] : memref<8x128xf32, #tpu.memory_space<vmem>>, vector<8x128xf32>
    %c0_128 = arith.constant 0 : index
    %c0_129 = arith.constant 0 : index
    %298 = vector.load %arg6[%c0_128, %c0_129] : memref<8x128xf32, #tpu.memory_space<vmem>>, vector<8x128xf32>
    %299 = arith.index_cast %c7_i32 : i32 to index
    %c0_130 = arith.constant 0 : index
    %c0_131 = arith.constant 0 : index
    %300 = vector.load %arg2[%299, %c0_130, %c0_131] : memref<8x8x512xbf16, #tpu.memory_space<vmem>>, vector<1x8x512xbf16>
    %301 = vector.shape_cast %300 : vector<1x8x512xbf16> to vector<8x512xbf16>
    %302 = arith.extf %301 : vector<8x512xbf16> to vector<8x512xf32>
    %303 = arith.truncf %297 : vector<8x128xf32> to vector<8x128xbf16>
    %c0_132 = arith.constant 0 : index
    %c0_133 = arith.constant 0 : index
    %304 = vector.load %arg3[%c0_132, %c0_133] : memref<128x512xbf16, #tpu.memory_space<vmem>>, vector<128x512xbf16>
    %cst_134 = arith.constant dense<0.000000e+00> : vector<8x512xf32>
    %305 = tpu.matmul %303, %304, %cst_134 {dimension_numbers = #tpu.dot_dimension_numbers<[1], [0], [0], [1], [0, 0, 1, 1], [], []>} : vector<8x128xbf16>, vector<128x512xbf16>, vector<8x512xf32> -> vector<8x512xf32>
    %306 = arith.addf %302, %305 : vector<8x512xf32>
    %307 = vector.extract_strided_slice %306 {offsets = [0, 0], sizes = [8, 128], strides = [1, 1]} : vector<8x512xf32> to vector<8x128xf32>
    %308 = arith.negf %307 : vector<8x128xf32>
    %309 = math.exp %308 : vector<8x128xf32>
    %cst_135 = arith.constant 1.000000e+00 : f32
    %310 = vector.broadcast %cst_135 : f32 to vector<8x128xf32>
    %311 = arith.addf %310, %309 : vector<8x128xf32>
    %312 = arith.divf %310, %311 : vector<8x128xf32>
    %313 = vector.extract_strided_slice %306 {offsets = [0, 128], sizes = [8, 128], strides = [1, 1]} : vector<8x512xf32> to vector<8x128xf32>
    %314 = arith.negf %313 : vector<8x128xf32>
    %315 = math.exp %314 : vector<8x128xf32>
    %cst_136 = arith.constant 1.000000e+00 : f32
    %316 = vector.broadcast %cst_136 : f32 to vector<8x128xf32>
    %317 = arith.addf %316, %315 : vector<8x128xf32>
    %318 = arith.divf %316, %317 : vector<8x128xf32>
    %319 = vector.extract_strided_slice %306 {offsets = [0, 256], sizes = [8, 128], strides = [1, 1]} : vector<8x512xf32> to vector<8x128xf32>
    %320 = math.tanh %319 : vector<8x128xf32>
    %321 = vector.extract_strided_slice %306 {offsets = [0, 384], sizes = [8, 128], strides = [1, 1]} : vector<8x512xf32> to vector<8x128xf32>
    %322 = arith.negf %321 : vector<8x128xf32>
    %323 = math.exp %322 : vector<8x128xf32>
    %cst_137 = arith.constant 1.000000e+00 : f32
    %324 = vector.broadcast %cst_137 : f32 to vector<8x128xf32>
    %325 = arith.addf %324, %323 : vector<8x128xf32>
    %326 = arith.divf %324, %325 : vector<8x128xf32>
    %327 = arith.mulf %318, %298 : vector<8x128xf32>
    %328 = arith.mulf %312, %320 : vector<8x128xf32>
    %329 = arith.addf %327, %328 : vector<8x128xf32>
    %330 = math.tanh %329 : vector<8x128xf32>
    %331 = arith.mulf %326, %330 : vector<8x128xf32>
    %c0_138 = arith.constant 0 : index
    %c0_139 = arith.constant 0 : index
    %332 = vector.load %arg5[%c0_138, %c0_139] : memref<8x128xf32, #tpu.memory_space<vmem>>, vector<8x128xf32>
    tpu.vector_store %arg5[%c0_138, %c0_139], %331 {strides = array<i32>} : memref<8x128xf32, #tpu.memory_space<vmem>>, vector<8x128xf32>,
    %c0_140 = arith.constant 0 : index
    %c0_141 = arith.constant 0 : index
    %333 = vector.load %arg6[%c0_140, %c0_141] : memref<8x128xf32, #tpu.memory_space<vmem>>, vector<8x128xf32>
    tpu.vector_store %arg6[%c0_140, %c0_141], %329 {strides = array<i32>} : memref<8x128xf32, #tpu.memory_space<vmem>>, vector<8x128xf32>,
    %334 = arith.truncf %331 : vector<8x128xf32> to vector<8x128xbf16>
    %335 = arith.index_cast %c7_i32 : i32 to index
    %c0_142 = arith.constant 0 : index
    %c0_143 = arith.constant 0 : index
    %336 = vector.load %arg4[%335, %c0_142, %c0_143] : memref<8x8x128xbf16, #tpu.memory_space<vmem>>, vector<1x8x128xbf16>
    %337 = vector.shape_cast %336 : vector<1x8x128xbf16> to vector<8x128xbf16>
    %338 = vector.shape_cast %334 : vector<8x128xbf16> to vector<1x8x128xbf16>
    tpu.vector_store %arg4[%335, %c0_142, %c0_143], %338 {strides = array<i32>} : memref<8x8x128xbf16, #tpu.memory_space<vmem>>, vector<1x8x128xbf16>,
    %c8_i32 = arith.constant 8 : i32
    return
  }
  func.func @transform_0(%arg0: i32, %arg1: i32) -> (i32, i32, i32) {
    %c0_i32 = arith.constant 0 : i32
    %c0_i32_0 = arith.constant 0 : i32
    return %arg1, %arg0, %c0_i32 : i32, i32, i32
  }
  func.func @transform_1(%arg0: i32, %arg1: i32) -> (i32, i32) {
    %c0_i32 = arith.constant 0 : i32
    %c0_i32_0 = arith.constant 0 : i32
    %c0_i32_1 = arith.constant 0 : i32
    return %c0_i32, %c0_i32_0 : i32, i32
  }
  func.func @transform_2(%arg0: i32, %arg1: i32) -> (i32, i32, i32) {
    %c0_i32 = arith.constant 0 : i32
    %c0_i32_0 = arith.constant 0 : i32
    return %arg1, %arg0, %c0_i32 : i32, i32, i32
  }
}

</mosaic_0001>

<bundles_post_ra>
// kernel: decoder_rnn_forward.3
= control target key start
LH: loop header
LB: loop body
LE: loop exit
PB: predicated region body
PF: predicated region fallthrough
CT: control target
= control target key end

     0   :  { %s355_s1 = inlined_call_operand.vmem [shape: bf16[128,128], index: 1, kind: input, shape index: {}]   ;;  %s356_s0 = inlined_call_operand.vmem [shape: bf16[64,128], index: 0, kind: input, shape index: {}]   ;;  %s357_s2 = inlined_call_operand.vmem [shape: f32[1,128], index: 2, kind: input, shape index: {}]   ;;  %s358_s3 = inlined_call_operand.vmem [shape: f32[64,128], index: 3, kind: output, shape index: {}]  }
   0x1   :  { %v260_v0 = vld [vmem:[%s355_s1] sm:$0xff]   ;;  %v261_v1 = vld [vmem:[%s355_s1 + $0x8] sm:$0xff]   ;;  %v262_v2 = vld [vmem:[%s355_s1 + $0x10] sm:$0xff]  }
   0x2   :  { %220 = vmatprep.subr.bf16.mxu0 %v260_v0  ;;  %244 = vmatprep.subr.bf16.mxu1 %v260_v0  ;;  %v263_v3 = vld [vmem:[%s355_s1 + $0x18] sm:$0xff]   ;;  %v268_v4 = vld [vmem:[%s356_s0] sm:$0xff]   ;;  %v269_v5 = vld [vmem:[%s356_s0 + $0x10] sm:$0xff]  }
   0x3   :  { %221 = vmatpush3.bf16.msra.mxu0 %v260_v0  ;;  %252 = vmatpush3.bf16.msra.mxu1 %v260_v0  ;;  %v264_v6 = vld [vmem:[%s355_s1 + $0x20] sm:$0xff]   ;;  %v265_v7 = vld [vmem:[%s355_s1 + $0x28] sm:$0xff]   ;;  %v266_v8 = vld [vmem:[%s355_s1 + $0x30] sm:$0xff]  }
   0x4   :  { %222 = vmatprep.subr.bf16.mxu0 %v261_v1  ;;  %245 = vmatprep.subr.bf16.mxu1 %v261_v1  ;;  %v267_v9 = vld [vmem:[%s355_s1 + $0x38] sm:$0xff]   ;;  %v270_v10 = vld [vmem:[%s356_s0 + $0x8] sm:$0xff]   ;;  %v195_v12 = vld [vmem:[%s357_s2] ss:$0 sm:$0xff] }
   0x5   :  { %236 = vmatprep.mubr.bf16.mxu0 %v268_v4  ;;  %240 = vmatprep.mubr.bf16.mxu1 %v269_v5  ;;  %v271_v11 = vld [vmem:[%s356_s0 + $0x18] sm:$0xff]  }
   0x7   :  { %223 = vmatpush3.bf16.msra.mxu0 %v261_v1  ;;  %253 = vmatpush3.bf16.msra.mxu1 %v261_v1 }
   0x8   :  { %224 = vmatprep.subr.bf16.mxu0 %v262_v2  ;;  %246 = vmatprep.subr.bf16.mxu1 %v262_v2 }
   0xb   :  { %225 = vmatpush3.bf16.msra.mxu0 %v262_v2  ;;  %254 = vmatpush3.bf16.msra.mxu1 %v262_v2 }
   0xc   :  { %226 = vmatprep.subr.bf16.mxu0 %v263_v3  ;;  %247 = vmatprep.subr.bf16.mxu1 %v263_v3 }
   0xf   :  { %227 = vmatpush3.bf16.msra.mxu0 %v263_v3  ;;  %255 = vmatpush3.bf16.msra.mxu1 %v263_v3 }
  0x10   :  { %228 = vmatprep.subr.bf16.mxu0 %v264_v6  ;;  %248 = vmatprep.subr.bf16.mxu1 %v264_v6 }
  0x13   :  { %229 = vmatpush3.bf16.msra.mxu0 %v264_v6  ;;  %256 = vmatpush3.bf16.msra.mxu1 %v264_v6 }
  0x14   :  { %230 = vmatprep.subr.bf16.mxu0 %v265_v7  ;;  %249 = vmatprep.subr.bf16.mxu1 %v265_v7 }
  0x17   :  { %231 = vmatpush3.bf16.msra.mxu0 %v265_v7  ;;  %257 = vmatpush3.bf16.msra.mxu1 %v265_v7 }
  0x18   :  { %232 = vmatprep.subr.bf16.mxu0 %v266_v8  ;;  %250 = vmatprep.subr.bf16.mxu1 %v266_v8 }
  0x1b   :  { %233 = vmatpush3.bf16.msra.mxu0 %v266_v8  ;;  %258 = vmatpush3.bf16.msra.mxu1 %v266_v8 }
  0x1c   :  { %234 = vmatprep.subr.bf16.mxu0 %v267_v9  ;;  %251 = vmatprep.subr.bf16.mxu1 %v267_v9 }
  0x1f   :  { %235 = vmatpush3.bf16.msra.mxu0 %v267_v9  ;;  %259 = vmatpush3.bf16.msra.mxu1 %v267_v9 }
  0x22   :  { %237 = vmatmul.mubr.bf16.vlgmr.msra.gmra.mrb[0].mxu0 %v270_v10  ;;  %241 = vmatmul.mubr.bf16.vlgmr.msra.gmra.mrb[0].mxu1 %v271_v11 }
  0xf5   :  { %v238_v13 = vpop.f32.mrb[0].mxu0  ;;  %v242_v14 = vpop.f32.mrb[0].mxu1 }
  0xf6   :  { %v161_v15 = vadd.f32 %v238_v13, %v195_v12  ;;  %v177_v16 = vadd.f32 %v242_v14, %v195_v12  ;;  %v152_v17 = vpop.f32.mrb[1].mxu0  ;;  %v168_v18 = vpop.f32.mrb[1].mxu1 }
  0xf7   :  { %v153_v19 = vadd.f32 %v195_v12, %v152_v17  ;;  %v169_v20 = vadd.f32 %v195_v12, %v168_v18  ;;  %v239_v21 = vpop.f32.mrb[2].mxu0  ;;  %v243_v22 = vpop.f32.mrb[2].mxu1 }
  0xf8   :  { %185 = vst [vmem:[%s358_s3 + $0x10] sm:$0xff] %v161_v15  ;;  %189 = vst [vmem:[%s358_s3 + $0x30] sm:$0xff] %v177_v16  ;;  %v164_v23 = vadd.f32 %v239_v21, %v195_v12  ;;  %v180_v24 = vadd.f32 %v243_v22, %v195_v12  ;;  %v155_v25 = vpop.f32.mrb[3].mxu0  ;;  %v171_v26 = vpop.f32.mrb[3].mxu1 }
  0xf9   :  { %183 = vst [vmem:[%s358_s3] sm:$0xff] %v153_v19  ;;  %187 = vst [vmem:[%s358_s3 + $0x20] sm:$0xff] %v169_v20  ;;  %v156_v27 = vadd.f32 %v195_v12, %v155_v25  ;;  %v172_v28 = vadd.f32 %v195_v12, %v171_v26 }
  0xfa   :  { %186 = vst [vmem:[%s358_s3 + $0x18] sm:$0xff] %v164_v23  ;;  %190 = vst [vmem:[%s358_s3 + $0x38] sm:$0xff] %v180_v24 }
  0xfb   :  { %184 = vst [vmem:[%s358_s3 + $0x8] sm:$0xff] %v156_v27  ;;  %188 = vst [vmem:[%s358_s3 + $0x28] sm:$0xff] %v172_v28 }

// kernel: decoder_rnn_forward.2
= control target key start
LH: loop header
LB: loop body
LE: loop exit
PB: predicated region body
PF: predicated region fallthrough
CT: control target
= control target key end

     0   :  { %v3083_v1 = vmov 0   ;;  %v3084_v33 = vmov 0.0|0.0   ;;  %s3788_s1 = inlined_call_operand.vmem [shape: bf16[128,512], index: 1, kind: input, shape index: {}]   ;;  %s3789_s0 = inlined_call_operand.vmem [shape: bf16[8,8,512], index: 0, kind: input, shape index: {}]   ;;  %s3790_s2 = inlined_call_operand.vmem [shape: bf16[8,8,128], index: 2, kind: output, shape index: {}]  }
   0x1   :  { %v3103_v0 = vld [vmem:[%s3788_s1 + $0x4] ss:$16 sps:$4 sm:$0xff]   ;;  %251 = vmatprep.mubr.bf16.mxu0 %v3083_v1  ;;  %292 = vmatprep.mubr.bf16.mxu1 %v3083_v1  ;;  %v3110_v2 = vld [vmem:[%s3788_s1] ss:$16 sps:$4 sm:$0xff]   ;;  %v3133_v6 = vld [vmem:[%s3788_s1 + $0xc] ss:$16 sps:$4 sm:$0xff]  }
   0x2   :  { %219 = vmatprep.subr.bf16.mxu0 %v3103_v0  ;;  %v3116_v3 = vld [vmem:[%s3788_s1 + $0x24] ss:$16 sps:$4 sm:$0xff]   ;;  %v3122_v4 = vld [vmem:[%s3788_s1 + $0x20] ss:$16 sps:$4 sm:$0xff]   ;;  %v3138_v7 = vld [vmem:[%s3788_s1 + $0x8] ss:$16 sps:$4 sm:$0xff]   ;;  %260 = vmatprep.subr.bf16.mxu1 %v3133_v6 }
   0x3   :  { %220 = vmatpush1.bf16.msra.mxu0 %v3110_v2  ;;  %v3128_v5 = vld [vmem:[%s3788_s1 + $0x44] ss:$16 sps:$4 sm:$0xff]   ;;  %v3144_v8 = vld [vmem:[%s3788_s1 + $0x40] ss:$16 sps:$4 sm:$0xff]   ;;  %261 = vmatpush1.bf16.msra.mxu1 %v3138_v7  ;;  %v3157_v10 = vld [vmem:[%s3788_s1 + $0x2c] ss:$16 sps:$4 sm:$0xff]  }
   0x4   :  { %221 = vmatprep.subr.bf16.mxu0 %v3116_v3  ;;  %v3151_v9 = vld [vmem:[%s3788_s1 + $0x64] ss:$16 sps:$4 sm:$0xff]   ;;  %v3162_v11 = vld [vmem:[%s3788_s1 + $0x28] ss:$16 sps:$4 sm:$0xff]   ;;  %262 = vmatprep.subr.bf16.mxu1 %v3157_v10  ;;  %v3169_v12 = vld [vmem:[%s3788_s1 + $0x60] ss:$16 sps:$4 sm:$0xff]  }
   0x5   :  { %v3174_v13 = vld [vmem:[%s3788_s1 + $0x84] ss:$16 sps:$4 sm:$0xff]   ;;  %v3179_v14 = vld [vmem:[%s3788_s1 + $0x4c] ss:$16 sps:$4 sm:$0xff]   ;;  %v3186_v15 = vld [vmem:[%s3788_s1 + $0x48] ss:$16 sps:$4 sm:$0xff]  }
   0x6   :  { %v3192_v16 = vld [vmem:[%s3788_s1 + $0x6c] ss:$16 sps:$4 sm:$0xff]   ;;  %v3198_v17 = vld [vmem:[%s3788_s1 + $0x80] ss:$16 sps:$4 sm:$0xff]   ;;  %v3204_v18 = vld [vmem:[%s3788_s1 + $0xa4] ss:$16 sps:$4 sm:$0xff]  }
   0x7   :  { %222 = vmatpush1.bf16.msra.mxu0 %v3122_v4  ;;  %263 = vmatpush1.bf16.msra.mxu1 %v3162_v11  ;;  %v3210_v19 = vld [vmem:[%s3788_s1 + $0x68] ss:$16 sps:$4 sm:$0xff]   ;;  %v3216_v20 = vld [vmem:[%s3788_s1 + $0x8c] ss:$16 sps:$4 sm:$0xff]   ;;  %v3222_v21 = vld [vmem:[%s3788_s1 + $0xa0] ss:$16 sps:$4 sm:$0xff]  }
   0x8   :  { %223 = vmatprep.subr.bf16.mxu0 %v3128_v5  ;;  %264 = vmatprep.subr.bf16.mxu1 %v3179_v14  ;;  %v3227_v22 = vld [vmem:[%s3788_s1 + $0xc4] ss:$16 sps:$4 sm:$0xff]   ;;  %v3234_v23 = vld [vmem:[%s3788_s1 + $0x88] ss:$16 sps:$4 sm:$0xff]   ;;  %v3239_v24 = vld [vmem:[%s3788_s1 + $0xc0] ss:$16 sps:$4 sm:$0xff]  }
   0x9   :  { %v3245_v25 = vld [vmem:[%s3788_s1 + $0xac] ss:$16 sps:$4 sm:$0xff]   ;;  %v3250_v26 = vld [vmem:[%s3788_s1 + $0xe4] ss:$16 sps:$4 sm:$0xff]   ;;  %v3255_v27 = vld [vmem:[%s3788_s1 + $0xa8] ss:$16 sps:$4 sm:$0xff]  }
   0xa   :  { %v3261_v28 = vld [vmem:[%s3788_s1 + $0xcc] ss:$16 sps:$4 sm:$0xff]   ;;  %v3268_v29 = vld [vmem:[%s3788_s1 + $0xe0] ss:$16 sps:$4 sm:$0xff]   ;;  %v3274_v30 = vld [vmem:[%s3788_s1 + $0xc8] ss:$16 sps:$4 sm:$0xff]  }
   0xb   :  { %224 = vmatpush1.bf16.msra.mxu0 %v3144_v8  ;;  %265 = vmatpush1.bf16.msra.mxu1 %v3186_v15  ;;  %v3280_v31 = vld [vmem:[%s3788_s1 + $0xec] ss:$16 sps:$4 sm:$0xff]   ;;  %v3290_v32 = vld [vmem:[%s3788_s1 + $0xe8] ss:$16 sps:$4 sm:$0xff]   ;;  %v20_v34 = vld [vmem:[%s3789_s0] sm:$0xff] }
   0xc   :  { %225 = vmatprep.subr.bf16.mxu0 %v3151_v9  ;;  %266 = vmatprep.subr.bf16.mxu1 %v3192_v16  ;;  %v22_v35 = vunpack.c.l.bf16 %v20_v34  ;;  %v23_v36 = vunpack.c.h.bf16 %v20_v34  ;;  %v21_v38 = vld [vmem:[%s3789_s0 + $0x8] sm:$0xff] }
   0xd   :  { %v25_v45 = vunpack.c.h.bf16 %v21_v38  ;;  %v24_v51 = vunpack.c.l.bf16 %v21_v38 }
   0xf   :  { %226 = vmatpush1.bf16.msra.mxu0 %v3169_v12  ;;  %267 = vmatpush1.bf16.msra.mxu1 %v3210_v19 }
  0x10   :  { %227 = vmatprep.subr.bf16.mxu0 %v3174_v13  ;;  %268 = vmatprep.subr.bf16.mxu1 %v3216_v20 }
  0x13   :  { %228 = vmatpush1.bf16.msra.mxu0 %v3198_v17  ;;  %269 = vmatpush1.bf16.msra.mxu1 %v3234_v23 }
  0x14   :  { %229 = vmatprep.subr.bf16.mxu0 %v3204_v18  ;;  %270 = vmatprep.subr.bf16.mxu1 %v3245_v25 }
  0x17   :  { %230 = vmatpush1.bf16.msra.mxu0 %v3222_v21  ;;  %271 = vmatpush1.bf16.msra.mxu1 %v3255_v27 }
  0x18   :  { %231 = vmatprep.subr.bf16.mxu0 %v3227_v22  ;;  %272 = vmatprep.subr.bf16.mxu1 %v3261_v28 }
  0x1b   :  { %232 = vmatpush1.bf16.msra.mxu0 %v3239_v24  ;;  %273 = vmatpush1.bf16.msra.mxu1 %v3274_v30 }
  0x1c   :  { %233 = vmatprep.subr.bf16.mxu0 %v3250_v26  ;;  %274 = vmatprep.subr.bf16.mxu1 %v3280_v31 }
  0x1f   :  { %234 = vmatpush1.bf16.msra.mxu0 %v3268_v29  ;;  %275 = vmatpush1.bf16.msra.mxu1 %v3290_v32 }
  0x20   :  { %535 = vmatprep.subr.bf16.mxu0 %v3103_v0  ;;  %576 = vmatprep.subr.bf16.mxu1 %v3133_v6 }
  0x22   :  { %252 = vmatmul.mubr.bf16.vlgmr.msra.gmra.mrb[0].mxu0 %v3084_v33  ;;  %293 = vmatmul.mubr.bf16.vlgmr.msra.gmra.mrb[0].mxu1 %v3084_v33 }
  0x23   :  { %536 = vmatpush1.bf16.msra.mxu0 %v3110_v2  ;;  %567 = vmatprep.mubr.bf16.mxu0 %v3083_v1 }
  0x24   :  { %537 = vmatprep.subr.bf16.mxu0 %v3116_v3  ;;  %577 = vmatpush1.bf16.msra.mxu1 %v3138_v7 }
  0x25   :  { %578 = vmatprep.subr.bf16.mxu1 %v3157_v10  ;;  %608 = vmatprep.mubr.bf16.mxu1 %v3083_v1 }
  0x27   :  { %538 = vmatpush1.bf16.msra.mxu0 %v3122_v4 }
  0x28   :  { %539 = vmatprep.subr.bf16.mxu0 %v3128_v5  ;;  %579 = vmatpush1.bf16.msra.mxu1 %v3162_v11 }
  0x29   :  { %580 = vmatprep.subr.bf16.mxu1 %v3179_v14 }
  0x2b   :  { %540 = vmatpush1.bf16.msra.mxu0 %v3144_v8 }
  0x2c   :  { %541 = vmatprep.subr.bf16.mxu0 %v3151_v9  ;;  %581 = vmatpush1.bf16.msra.mxu1 %v3186_v15 }
  0x2d   :  { %582 = vmatprep.subr.bf16.mxu1 %v3192_v16 }
  0x2f   :  { %542 = vmatpush1.bf16.msra.mxu0 %v3169_v12 }
  0x30   :  { %543 = vmatprep.subr.bf16.mxu0 %v3174_v13  ;;  %583 = vmatpush1.bf16.msra.mxu1 %v3210_v19 }
  0x31   :  { %584 = vmatprep.subr.bf16.mxu1 %v3216_v20 }
  0x33   :  { %544 = vmatpush1.bf16.msra.mxu0 %v3198_v17 }
  0x34   :  { %545 = vmatprep.subr.bf16.mxu0 %v3204_v18  ;;  %585 = vmatpush1.bf16.msra.mxu1 %v3234_v23 }
  0x35   :  { %586 = vmatprep.subr.bf16.mxu1 %v3245_v25 }
  0x37   :  { %546 = vmatpush1.bf16.msra.mxu0 %v3222_v21 }
  0x38   :  { %547 = vmatprep.subr.bf16.mxu0 %v3227_v22  ;;  %587 = vmatpush1.bf16.msra.mxu1 %v3255_v27 }
  0x39   :  { %588 = vmatprep.subr.bf16.mxu1 %v3261_v28 }
  0x3b   :  { %548 = vmatpush1.bf16.msra.mxu0 %v3239_v24 }
  0x3c   :  { %549 = vmatprep.subr.bf16.mxu0 %v3250_v26  ;;  %589 = vmatpush1.bf16.msra.mxu1 %v3274_v30 }
  0x3d   :  { %590 = vmatprep.subr.bf16.mxu1 %v3280_v31 }
  0x3f   :  { %550 = vmatpush1.bf16.msra.mxu0 %v3268_v29 }
  0x40   :  { %852 = vmatprep.subr.bf16.mxu0 %v3103_v0  ;;  %591 = vmatpush1.bf16.msra.mxu1 %v3290_v32 }
  0x41   :  { %893 = vmatprep.subr.bf16.mxu1 %v3133_v6 }
  0xf5   :  { %v253_v37 = vpop.f32.mrb[0].mxu0  ;;  %v294_v47 = vpop.f32.mrb[0].mxu1 }
  0xf6   :  { %v301_v39 = vadd.f32 %v253_v37, %v22_v35  ;;  %v255_v40 = vpop.f32.mrb[1].mxu0  ;;  %v296_v48 = vpop.f32.mrb[1].mxu1  ;;  %v303_v54 = vadd.f32 %v294_v47, %v24_v51 }
  0xf7   :  { %v302_v41 = vadd.f32 %v255_v40, %v23_v36  ;;  %v257_v42 = vpop.f32.mrb[2].mxu0  ;;  %v304_v49 = vadd.f32 %v296_v48, %v25_v45  ;;  %v298_v50 = vpop.f32.mrb[2].mxu1  ;;  %v2591_v40 = vld [vmem:[%s3789_s0 + $0x10] sm:$0xff] }
  0xf8   :  { %v2588_v43 = vmul.f32 -1.442695, %v301_v39  ;;  %v258_v44 = vpop.f32.mrb[3].mxu0  ;;  %v299_v52 = vpop.f32.mrb[3].mxu1  ;;  %v339_v42 = vunpack.c.h.bf16 %v2591_v40 }
  0xf9   :  { %v2589_v46 = vmul.f32 -1.442695, %v302_v41  ;;  %v2590_v53 = vmul.f32 -1.442695, %v304_v49  ;;  %v338_v41 = vunpack.c.l.bf16 %v2591_v40 }
  0xfa   :  { %2955 = vpow2.f32 %v2588_v43 }
  0xfb   :  { %2957 = vpow2.f32 %v2589_v46  ;;  %v2592_v46 = vld [vmem:[%s3789_s0 + $0x18] sm:$0xff] }
  0xfc   :  { %2959 = vpow2.f32 %v2590_v53 }
  0xfd   :  { %2961 = vtanh.f32 %v303_v54  ;;  %v341_v54 = vunpack.c.h.bf16 %v2592_v46 }
 0x104   :  { %v2956_v55 = vpop.eup %2955 }
 0x105   :  { %v2958_v56 = vpop.eup %2957  ;;  %v308_v57 = vadd.f32 1.0, %v2956_v55 }
 0x106   :  { %v314_v58 = vadd.f32 1.0, %v2958_v56  ;;  %v2960_v59 = vpop.eup %2959  ;;  %v340_v56 = vunpack.c.l.bf16 %v2592_v46 }
 0x107   :  { %2963 = vrcp.f32 %v308_v57  ;;  %v2962_v60 = vpop.eup %2961  ;;  %v321_v62 = vadd.f32 1.0, %v2960_v59 }
 0x108   :  { %2965 = vrcp.f32 %v314_v58 }
 0x109   :  { %2967 = vrcp.f32 %v321_v62 }
 0x111   :  { %v2964_v61 = vpop.eup %2963 }
 0x112   :  { %v2966_v63 = vpop.eup %2965  ;;  %v325_v33 = vmul.f32 %v2964_v61, %v2962_v60 }
 0x113   :  { %v324_v34 = vmul.f32 0.0, %v2966_v63  ;;  %v2968_v36 = vpop.eup %2967 }
 0x115   :  { %v3336_v35 = vadd.f32 %v325_v33, %v324_v34 }
 0x117   :  { %2969 = vtanh.f32 %v3336_v35 }
 0x121   :  { %v2970_v37 = vpop.eup %2969 }
 0x122   :  { %v328_v38 = vmul.f32 %v2970_v37, %v2968_v36 }
 0x124   :  { %v331_v39 = vpack.c.bf16 %v328_v38, %v328_v38 }
 0x126   :  { %332 = vst [vmem:[%s3790_s2] sm:$0xf] %v331_v39  ;;  %568 = vmatmul.mubr.bf16.vlgmr.msra.gmra.mrb[4].mxu0 %v331_v39  ;;  %609 = vmatmul.mubr.bf16.vlgmr.msra.gmra.mrb[4].mxu1 %v331_v39 }
 0x127   :  { %853 = vmatpush1.bf16.msra.mxu0 %v3110_v2  ;;  %894 = vmatpush1.bf16.msra.mxu1 %v3138_v7 }
 0x128   :  { %854 = vmatprep.subr.bf16.mxu0 %v3116_v3  ;;  %895 = vmatprep.subr.bf16.mxu1 %v3157_v10 }
 0x129   :  { %884 = vmatprep.mubr.bf16.mxu0 %v3083_v1  ;;  %925 = vmatprep.mubr.bf16.mxu1 %v3083_v1 }
 0x12b   :  { %855 = vmatpush1.bf16.msra.mxu0 %v3122_v4  ;;  %896 = vmatpush1.bf16.msra.mxu1 %v3162_v11 }
 0x12c   :  { %856 = vmatprep.subr.bf16.mxu0 %v3128_v5  ;;  %897 = vmatprep.subr.bf16.mxu1 %v3179_v14 }
 0x12f   :  { %857 = vmatpush1.bf16.msra.mxu0 %v3144_v8  ;;  %898 = vmatpush1.bf16.msra.mxu1 %v3186_v15 }
 0x130   :  { %858 = vmatprep.subr.bf16.mxu0 %v3151_v9  ;;  %899 = vmatprep.subr.bf16.mxu1 %v3192_v16 }
 0x133   :  { %859 = vmatpush1.bf16.msra.mxu0 %v3169_v12  ;;  %900 = vmatpush1.bf16.msra.mxu1 %v3210_v19 }
 0x134   :  { %860 = vmatprep.subr.bf16.mxu0 %v3174_v13  ;;  %901 = vmatprep.subr.bf16.mxu1 %v3216_v20 }
 0x137   :  { %861 = vmatpush1.bf16.msra.mxu0 %v3198_v17  ;;  %902 = vmatpush1.bf16.msra.mxu1 %v3234_v23 }
 0x138   :  { %862 = vmatprep.subr.bf16.mxu0 %v3204_v18  ;;  %903 = vmatprep.subr.bf16.mxu1 %v3245_v25 }
 0x13b   :  { %863 = vmatpush1.bf16.msra.mxu0 %v3222_v21  ;;  %904 = vmatpush1.bf16.msra.mxu1 %v3255_v27 }
 0x13c   :  { %864 = vmatprep.subr.bf16.mxu0 %v3227_v22  ;;  %905 = vmatprep.subr.bf16.mxu1 %v3261_v28 }
 0x13f   :  { %865 = vmatpush1.bf16.msra.mxu0 %v3239_v24  ;;  %906 = vmatpush1.bf16.msra.mxu1 %v3274_v30 }
 0x140   :  { %866 = vmatprep.subr.bf16.mxu0 %v3250_v26  ;;  %907 = vmatprep.subr.bf16.mxu1 %v3280_v31 }
 0x143   :  { %867 = vmatpush1.bf16.msra.mxu0 %v3268_v29  ;;  %908 = vmatpush1.bf16.msra.mxu1 %v3290_v32 }
 0x144   :  { %1169 = vmatprep.subr.bf16.mxu0 %v3103_v0  ;;  %1210 = vmatprep.subr.bf16.mxu1 %v3133_v6 }
 0x1f9   :  { %v569_v43 = vpop.f32.mrb[4].mxu0  ;;  %v610_v44 = vpop.f32.mrb[4].mxu1 }
 0x1fa   :  { %v617_v45 = vadd.f32 %v569_v43, %v338_v41  ;;  %v571_v47 = vpop.f32.mrb[5].mxu0  ;;  %v612_v48 = vpop.f32.mrb[5].mxu1  ;;  %v619_v58 = vadd.f32 %v610_v44, %v340_v56  ;;  %v3478_v56 = vld [vmem:[%s3788_s1 + $0x28] ss:$16 sps:$4 sm:$0xff]  }
 0x1fb   :  { %v618_v49 = vadd.f32 %v571_v47, %v339_v42  ;;  %v573_v50 = vpop.f32.mrb[6].mxu0  ;;  %v614_v0 = vpop.f32.mrb[6].mxu1  ;;  %v620_v55 = vadd.f32 %v612_v48, %v341_v54  ;;  %v3468_v54 = vld [vmem:[%s3788_s1 + $0x2c] ss:$16 sps:$4 sm:$0xff]  }
 0x1fc   :  { %v2625_v51 = vmul.f32 -1.442695, %v617_v45  ;;  %v574_v6 = vpop.f32.mrb[7].mxu0  ;;  %v615_v52 = vpop.f32.mrb[7].mxu1  ;;  %v3439_v0 = vld [vmem:[%s3788_s1 + $0x4] ss:$16 sps:$4 sm:$0xff]  }
 0x1fd   :  { %v2626_v53 = vmul.f32 -1.442695, %v618_v49  ;;  %v2627_v57 = vmul.f32 -1.442695, %v620_v55  ;;  %v3449_v6 = vld [vmem:[%s3788_s1] ss:$16 sps:$4 sm:$0xff]  }
 0x1fe   :  { %2971 = vpow2.f32 %v2625_v51  ;;  %v3444_v51 = vld [vmem:[%s3788_s1 + $0xc] ss:$16 sps:$4 sm:$0xff]   ;;  %v3454_v52 = vld [vmem:[%s3788_s1 + $0x8] ss:$16 sps:$4 sm:$0xff]   ;;  %v3473_v55 = vld [vmem:[%s3788_s1 + $0x20] ss:$16 sps:$4 sm:$0xff]  }
 0x1ff   :  { %2973 = vpow2.f32 %v2626_v53  ;;  %v3463_v53 = vld [vmem:[%s3788_s1 + $0x24] ss:$16 sps:$4 sm:$0xff]  }
 0x200   :  { %2975 = vpow2.f32 %v2627_v57  ;;  %v3487_v57 = vld [vmem:[%s3788_s1 + $0x44] ss:$16 sps:$4 sm:$0xff]  }
 0x201   :  { %2977 = vtanh.f32 %v619_v58  ;;  %v3492_v58 = vld [vmem:[%s3788_s1 + $0x4c] ss:$16 sps:$4 sm:$0xff]  }
 0x208   :  { %v2972_v59 = vpop.eup %2971 }
 0x209   :  { %v2974_v60 = vpop.eup %2973  ;;  %v624_v61 = vadd.f32 1.0, %v2972_v59  ;;  %v3497_v59 = vld [vmem:[%s3788_s1 + $0x40] ss:$16 sps:$4 sm:$0xff]  }
 0x20a   :  { %v630_v62 = vadd.f32 1.0, %v2974_v60  ;;  %v2976_v63 = vpop.eup %2975  ;;  %v3502_v60 = vld [vmem:[%s3788_s1 + $0x48] ss:$16 sps:$4 sm:$0xff]  }
 0x20b   :  { %2979 = vrcp.f32 %v624_v61  ;;  %v2978_v33 = vpop.eup %2977  ;;  %v637_v38 = vadd.f32 1.0, %v2976_v63  ;;  %v3511_v61 = vld [vmem:[%s3788_s1 + $0x64] ss:$16 sps:$4 sm:$0xff]   ;;  %v3521_v63 = vld [vmem:[%s3788_s1 + $0x60] ss:$16 sps:$4 sm:$0xff]  }
 0x20c   :  { %2981 = vrcp.f32 %v630_v62  ;;  %v3516_v62 = vld [vmem:[%s3788_s1 + $0x6c] ss:$16 sps:$4 sm:$0xff]  }
 0x20d   :  { %2983 = vrcp.f32 %v637_v38  ;;  %v3550_v38 = vld [vmem:[%s3788_s1 + $0x8c] ss:$16 sps:$4 sm:$0xff]  }
 0x215   :  { %v2980_v34 = vpop.eup %2979 }
 0x216   :  { %v2982_v36 = vpop.eup %2981  ;;  %v641_v37 = vmul.f32 %v2980_v34, %v2978_v33  ;;  %v3526_v33 = vld [vmem:[%s3788_s1 + $0x68] ss:$16 sps:$4 sm:$0xff]   ;;  %v3535_v34 = vld [vmem:[%s3788_s1 + $0x80] ss:$16 sps:$4 sm:$0xff]  }
 0x217   :  { %v640_v39 = vmul.f32 %v2982_v36, %v3336_v35  ;;  %v2984_v41 = vpop.eup %2983  ;;  %v3540_v36 = vld [vmem:[%s3788_s1 + $0x84] ss:$16 sps:$4 sm:$0xff]  }
 0x219   :  { %v3383_v40 = vadd.f32 %v641_v37, %v640_v39  ;;  %v3545_v37 = vld [vmem:[%s3788_s1 + $0x88] ss:$16 sps:$4 sm:$0xff]   ;;  %v3555_v39 = vld [vmem:[%s3788_s1 + $0xa4] ss:$16 sps:$4 sm:$0xff]  }
 0x21b   :  { %2985 = vtanh.f32 %v3383_v40 }
 0x225   :  { %v2986_v42 = vpop.eup %2985 }
 0x226   :  { %v644_v43 = vmul.f32 %v2986_v42, %v2984_v41  ;;  %v3568_v41 = vld [vmem:[%s3788_s1 + $0xa0] ss:$16 sps:$4 sm:$0xff]   ;;  %v3575_v42 = vld [vmem:[%s3788_s1 + $0xa8] ss:$16 sps:$4 sm:$0xff]  }
 0x228   :  { %v647_v44 = vpack.c.bf16 %v644_v43, %v644_v43  ;;  %v3580_v43 = vld [vmem:[%s3788_s1 + $0xc4] ss:$16 sps:$4 sm:$0xff]  }
 0x22a   :  { %2628 = vst [vmem:[%s3790_s2 + $0x4] sm:$0xf] %v647_v44  ;;  %885 = vmatmul.mubr.bf16.vlgmr.msra.gmra.mrb[8].mxu0 %v647_v44  ;;  %926 = vmatmul.mubr.bf16.vlgmr.msra.gmra.mrb[8].mxu1 %v647_v44  ;;  %v3586_v44 = vld [vmem:[%s3788_s1 + $0xcc] ss:$16 sps:$4 sm:$0xff]  }
 0x22b   :  { %1170 = vmatpush1.bf16.msra.mxu0 %v3110_v2  ;;  %1211 = vmatpush1.bf16.msra.mxu1 %v3138_v7  ;;  %v2629_v2 = vld [vmem:[%s3789_s0 + $0x20] sm:$0xff] }
 0x22c   :  { %1171 = vmatprep.subr.bf16.mxu0 %v3116_v3  ;;  %1212 = vmatprep.subr.bf16.mxu1 %v3157_v10  ;;  %v655_v3 = vunpack.c.l.bf16 %v2629_v2 }
 0x22d   :  { %1201 = vmatprep.mubr.bf16.mxu0 %v3083_v1  ;;  %1242 = vmatprep.mubr.bf16.mxu1 %v3083_v1 }
 0x22f   :  { %1172 = vmatpush1.bf16.msra.mxu0 %v3122_v4  ;;  %1213 = vmatpush1.bf16.msra.mxu1 %v3162_v11  ;;  %v656_v4 = vunpack.c.h.bf16 %v2629_v2  ;;  %v3592_v2 = vld [vmem:[%s3788_s1 + $0xc0] ss:$16 sps:$4 sm:$0xff]  }
 0x230   :  { %1173 = vmatprep.subr.bf16.mxu0 %v3128_v5  ;;  %1214 = vmatprep.subr.bf16.mxu1 %v3179_v14 }
 0x233   :  { %1174 = vmatpush1.bf16.msra.mxu0 %v3144_v8  ;;  %1215 = vmatpush1.bf16.msra.mxu1 %v3186_v15 }
 0x234   :  { %1175 = vmatprep.subr.bf16.mxu0 %v3151_v9  ;;  %1216 = vmatprep.subr.bf16.mxu1 %v3192_v16  ;;  %v2630_v9 = vld [vmem:[%s3789_s0 + $0x28] sm:$0xff] }
 0x237   :  { %1176 = vmatpush1.bf16.msra.mxu0 %v3169_v12  ;;  %1217 = vmatpush1.bf16.msra.mxu1 %v3210_v19  ;;  %v658_v19 = vunpack.c.h.bf16 %v2630_v9 }
 0x238   :  { %1177 = vmatprep.subr.bf16.mxu0 %v3174_v13  ;;  %1218 = vmatprep.subr.bf16.mxu1 %v3216_v20 }
 0x23b   :  { %1178 = vmatpush1.bf16.msra.mxu0 %v3198_v17  ;;  %1219 = vmatpush1.bf16.msra.mxu1 %v3234_v23 }
 0x23c   :  { %1179 = vmatprep.subr.bf16.mxu0 %v3204_v18  ;;  %1220 = vmatprep.subr.bf16.mxu1 %v3245_v25 }
 0x23f   :  { %1180 = vmatpush1.bf16.msra.mxu0 %v3222_v21  ;;  %1221 = vmatpush1.bf16.msra.mxu1 %v3255_v27  ;;  %v657_v21 = vunpack.c.l.bf16 %v2630_v9  ;;  %v2667_v9 = vld [vmem:[%s3789_s0 + $0x30] sm:$0xff] }
 0x240   :  { %1181 = vmatprep.subr.bf16.mxu0 %v3227_v22  ;;  %1222 = vmatprep.subr.bf16.mxu1 %v3261_v28 }
 0x243   :  { %1182 = vmatpush1.bf16.msra.mxu0 %v3239_v24  ;;  %1223 = vmatpush1.bf16.msra.mxu1 %v3274_v30 }
 0x244   :  { %1183 = vmatprep.subr.bf16.mxu0 %v3250_v26  ;;  %1224 = vmatprep.subr.bf16.mxu1 %v3280_v31 }
 0x247   :  { %1184 = vmatpush1.bf16.msra.mxu0 %v3268_v29  ;;  %1225 = vmatpush1.bf16.msra.mxu1 %v3290_v32 }
 0x248   :  { %1486 = vmatprep.subr.bf16.mxu0 %v3439_v0  ;;  %1527 = vmatprep.subr.bf16.mxu1 %v3444_v51 }
 0x2fd   :  { %v886_v5 = vpop.f32.mrb[8].mxu0  ;;  %v927_v7 = vpop.f32.mrb[8].mxu1 }
 0x2fe   :  { %v934_v8 = vadd.f32 %v886_v5, %v655_v3  ;;  %v888_v10 = vpop.f32.mrb[9].mxu0  ;;  %v929_v11 = vpop.f32.mrb[9].mxu1  ;;  %v936_v23 = vadd.f32 %v927_v7, %v657_v21  ;;  %v3599_v3 = vld [vmem:[%s3788_s1 + $0xc8] ss:$16 sps:$4 sm:$0xff]   ;;  %v3610_v5 = vld [vmem:[%s3788_s1 + $0xec] ss:$16 sps:$4 sm:$0xff]  }
 0x2ff   :  { %v935_v12 = vadd.f32 %v888_v10, %v656_v4  ;;  %v890_v13 = vpop.f32.mrb[10].mxu0  ;;  %v931_v14 = vpop.f32.mrb[10].mxu1  ;;  %v937_v20 = vadd.f32 %v929_v11, %v658_v19  ;;  %v3604_v4 = vld [vmem:[%s3788_s1 + $0xe4] ss:$16 sps:$4 sm:$0xff]   ;;  %v3616_v7 = vld [vmem:[%s3788_s1 + $0xe0] ss:$16 sps:$4 sm:$0xff]   ;;  %v972_v10 = vunpack.c.l.bf16 %v2667_v9  ;;  %v973_v11 = vunpack.c.h.bf16 %v2667_v9 }
 0x300   :  { %v2663_v15 = vmul.f32 -1.442695, %v934_v8  ;;  %v891_v16 = vpop.f32.mrb[11].mxu0  ;;  %v932_v17 = vpop.f32.mrb[11].mxu1  ;;  %v3623_v8 = vld [vmem:[%s3788_s1 + $0xe8] ss:$16 sps:$4 sm:$0xff]  }
 0x301   :  { %v2664_v18 = vmul.f32 -1.442695, %v935_v12  ;;  %v2665_v22 = vmul.f32 -1.442695, %v937_v20 }
 0x302   :  { %2987 = vpow2.f32 %v2663_v15  ;;  %v2668_v15 = vld [vmem:[%s3789_s0 + $0x38] sm:$0xff] }
 0x303   :  { %2989 = vpow2.f32 %v2664_v18 }
 0x304   :  { %2991 = vpow2.f32 %v2665_v22 }
 0x305   :  { %2993 = vtanh.f32 %v936_v23 }
 0x30c   :  { %v2988_v24 = vpop.eup %2987 }
 0x30d   :  { %v2990_v25 = vpop.eup %2989  ;;  %v941_v26 = vadd.f32 1.0, %v2988_v24 }
 0x30e   :  { %v947_v27 = vadd.f32 1.0, %v2990_v25  ;;  %v2992_v28 = vpop.eup %2991  ;;  %v975_v25 = vunpack.c.h.bf16 %v2668_v15 }
 0x30f   :  { %2995 = vrcp.f32 %v941_v26  ;;  %v2994_v29 = vpop.eup %2993  ;;  %v954_v35 = vadd.f32 1.0, %v2992_v28 }
 0x310   :  { %2997 = vrcp.f32 %v947_v27  ;;  %v974_v27 = vunpack.c.l.bf16 %v2668_v15 }
 0x311   :  { %2999 = vrcp.f32 %v954_v35 }
 0x319   :  { %v2996_v30 = vpop.eup %2995 }
 0x31a   :  { %v2998_v31 = vpop.eup %2997  ;;  %v958_v32 = vmul.f32 %v2996_v30, %v2994_v29 }
 0x31b   :  { %v957_v45 = vmul.f32 %v2998_v31, %v3383_v40  ;;  %v3000_v47 = vpop.eup %2999  ;;  %v3561_v40 = vld [vmem:[%s3788_s1 + $0xac] ss:$16 sps:$4 sm:$0xff]  }
 0x31d   :  { %v3428_v46 = vadd.f32 %v958_v32, %v957_v45 }
 0x31f   :  { %3001 = vtanh.f32 %v3428_v46 }
 0x329   :  { %v3002_v48 = vpop.eup %3001 }
 0x32a   :  { %v961_v49 = vmul.f32 %v3002_v48, %v3000_v47 }
 0x32c   :  { %v964_v50 = vpack.c.bf16 %v961_v49, %v961_v49 }
 0x32e   :  { %2666 = vst [vmem:[%s3790_s2 + $0x8] sm:$0xf] %v964_v50  ;;  %1202 = vmatmul.mubr.bf16.vlgmr.msra.gmra.mrb[12].mxu0 %v964_v50  ;;  %1243 = vmatmul.mubr.bf16.vlgmr.msra.gmra.mrb[12].mxu1 %v964_v50 }
 0x32f   :  { %1518 = vmatprep.mubr.bf16.mxu0 %v3083_v1  ;;  %1559 = vmatprep.mubr.bf16.mxu1 %v3083_v1 }
 0x330   :  { %1487 = vmatpush1.bf16.msra.mxu0 %v3449_v6  ;;  %1528 = vmatpush1.bf16.msra.mxu1 %v3454_v52 }
 0x331   :  { %1488 = vmatprep.subr.bf16.mxu0 %v3463_v53  ;;  %1529 = vmatprep.subr.bf16.mxu1 %v3468_v54 }
 0x334   :  { %1489 = vmatpush1.bf16.msra.mxu0 %v3473_v55  ;;  %1530 = vmatpush1.bf16.msra.mxu1 %v3478_v56 }
 0x335   :  { %1490 = vmatprep.subr.bf16.mxu0 %v3487_v57  ;;  %1531 = vmatprep.subr.bf16.mxu1 %v3492_v58 }
 0x338   :  { %1491 = vmatpush1.bf16.msra.mxu0 %v3497_v59  ;;  %1532 = vmatpush1.bf16.msra.mxu1 %v3502_v60 }
 0x339   :  { %1492 = vmatprep.subr.bf16.mxu0 %v3511_v61  ;;  %1533 = vmatprep.subr.bf16.mxu1 %v3516_v62 }
 0x33c   :  { %1493 = vmatpush1.bf16.msra.mxu0 %v3521_v63  ;;  %1534 = vmatpush1.bf16.msra.mxu1 %v3526_v33 }
 0x33d   :  { %1494 = vmatprep.subr.bf16.mxu0 %v3540_v36  ;;  %1535 = vmatprep.subr.bf16.mxu1 %v3550_v38 }
 0x340   :  { %1495 = vmatpush1.bf16.msra.mxu0 %v3535_v34  ;;  %1536 = vmatpush1.bf16.msra.mxu1 %v3545_v37 }
 0x341   :  { %1496 = vmatprep.subr.bf16.mxu0 %v3555_v39  ;;  %1537 = vmatprep.subr.bf16.mxu1 %v3561_v40 }
 0x344   :  { %1497 = vmatpush1.bf16.msra.mxu0 %v3568_v41  ;;  %1538 = vmatpush1.bf16.msra.mxu1 %v3575_v42 }
 0x345   :  { %1498 = vmatprep.subr.bf16.mxu0 %v3580_v43  ;;  %1539 = vmatprep.subr.bf16.mxu1 %v3586_v44 }
 0x348   :  { %1499 = vmatpush1.bf16.msra.mxu0 %v3592_v2  ;;  %1540 = vmatpush1.bf16.msra.mxu1 %v3599_v3 }
 0x349   :  { %1500 = vmatprep.subr.bf16.mxu0 %v3604_v4  ;;  %1541 = vmatprep.subr.bf16.mxu1 %v3610_v5 }
 0x34c   :  { %1501 = vmatpush1.bf16.msra.mxu0 %v3616_v7  ;;  %1542 = vmatpush1.bf16.msra.mxu1 %v3623_v8 }
 0x34d   :  { %1803 = vmatprep.subr.bf16.mxu0 %v3439_v0  ;;  %1844 = vmatprep.subr.bf16.mxu1 %v3444_v51 }
 0x401   :  { %v1203_v12 = vpop.f32.mrb[12].mxu0  ;;  %v1244_v13 = vpop.f32.mrb[12].mxu1 }
 0x402   :  { %v1251_v14 = vadd.f32 %v1203_v12, %v972_v10  ;;  %v1205_v16 = vpop.f32.mrb[13].mxu0  ;;  %v1246_v17 = vpop.f32.mrb[13].mxu1  ;;  %v1253_v29 = vadd.f32 %v1244_v13, %v974_v27 }
 0x403   :  { %v1252_v18 = vadd.f32 %v1205_v16, %v973_v11  ;;  %v1207_v19 = vpop.f32.mrb[14].mxu0  ;;  %v1248_v20 = vpop.f32.mrb[14].mxu1  ;;  %v1254_v26 = vadd.f32 %v1246_v17, %v975_v25 }
 0x404   :  { %v2701_v21 = vmul.f32 -1.442695, %v1251_v14  ;;  %v1208_v22 = vpop.f32.mrb[15].mxu0  ;;  %v1249_v23 = vpop.f32.mrb[15].mxu1 }
 0x405   :  { %v2702_v24 = vmul.f32 -1.442695, %v1252_v18  ;;  %v2703_v28 = vmul.f32 -1.442695, %v1254_v26 }
 0x406   :  { %3003 = vpow2.f32 %v2701_v21  ;;  %v2706_v21 = vld [vmem:[%s3789_s0 + $0x48] sm:$0xff] }
 0x407   :  { %3005 = vpow2.f32 %v2702_v24 }
 0x408   :  { %3007 = vpow2.f32 %v2703_v28 }
 0x409   :  { %3009 = vtanh.f32 %v1253_v29 }
 0x410   :  { %v3004_v30 = vpop.eup %3003 }
 0x411   :  { %v3006_v31 = vpop.eup %3005  ;;  %v1258_v32 = vadd.f32 1.0, %v3004_v30 }
 0x412   :  { %v1264_v35 = vadd.f32 1.0, %v3006_v31  ;;  %v3008_v45 = vpop.eup %3007  ;;  %v1292_v31 = vunpack.c.h.bf16 %v2706_v21 }
 0x413   :  { %3011 = vrcp.f32 %v1258_v32  ;;  %v3010_v47 = vpop.eup %3009  ;;  %v1271_v9 = vadd.f32 1.0, %v3008_v45 }
 0x414   :  { %3013 = vrcp.f32 %v1264_v35  ;;  %v1291_v35 = vunpack.c.l.bf16 %v2706_v21 }
 0x415   :  { %3015 = vrcp.f32 %v1271_v9 }
 0x41d   :  { %v3012_v48 = vpop.eup %3011 }
 0x41e   :  { %v3014_v49 = vpop.eup %3013  ;;  %v1275_v50 = vmul.f32 %v3012_v48, %v3010_v47 }
 0x41f   :  { %v1274_v10 = vmul.f32 %v3014_v49, %v3428_v46  ;;  %v3016_v12 = vpop.eup %3015  ;;  %v2705_v46 = vld [vmem:[%s3789_s0 + $0x40] sm:$0xff] }
 0x420   :  { %v1289_v16 = vunpack.c.l.bf16 %v2705_v46  ;;  %v1290_v17 = vunpack.c.h.bf16 %v2705_v46 }
 0x421   :  { %v3637_v11 = vadd.f32 %v1275_v50, %v1274_v10 }
 0x423   :  { %3017 = vtanh.f32 %v3637_v11 }
 0x42d   :  { %v3018_v13 = vpop.eup %3017 }
 0x42e   :  { %v1278_v14 = vmul.f32 %v3018_v13, %v3016_v12 }
 0x430   :  { %v1281_v15 = vpack.c.bf16 %v1278_v14, %v1278_v14 }
 0x432   :  { %2704 = vst [vmem:[%s3790_s2 + $0xc] sm:$0xf] %v1281_v15  ;;  %1519 = vmatmul.mubr.bf16.vlgmr.msra.gmra.mrb[16].mxu0 %v1281_v15  ;;  %1560 = vmatmul.mubr.bf16.vlgmr.msra.gmra.mrb[16].mxu1 %v1281_v15 }
 0x433   :  { %1804 = vmatpush1.bf16.msra.mxu0 %v3449_v6  ;;  %1845 = vmatpush1.bf16.msra.mxu1 %v3454_v52 }
 0x434   :  { %1805 = vmatprep.subr.bf16.mxu0 %v3463_v53  ;;  %1846 = vmatprep.subr.bf16.mxu1 %v3468_v54 }
 0x435   :  { %1835 = vmatprep.mubr.bf16.mxu0 %v3083_v1  ;;  %1876 = vmatprep.mubr.bf16.mxu1 %v3083_v1 }
 0x437   :  { %1806 = vmatpush1.bf16.msra.mxu0 %v3473_v55  ;;  %1847 = vmatpush1.bf16.msra.mxu1 %v3478_v56 }
 0x438   :  { %1807 = vmatprep.subr.bf16.mxu0 %v3487_v57  ;;  %1848 = vmatprep.subr.bf16.mxu1 %v3492_v58 }
 0x43b   :  { %1808 = vmatpush1.bf16.msra.mxu0 %v3497_v59  ;;  %1849 = vmatpush1.bf16.msra.mxu1 %v3502_v60 }
 0x43c   :  { %1809 = vmatprep.subr.bf16.mxu0 %v3511_v61  ;;  %1850 = vmatprep.subr.bf16.mxu1 %v3516_v62 }
 0x43f   :  { %1810 = vmatpush1.bf16.msra.mxu0 %v3521_v63  ;;  %1851 = vmatpush1.bf16.msra.mxu1 %v3526_v33 }
 0x440   :  { %1811 = vmatprep.subr.bf16.mxu0 %v3540_v36  ;;  %1852 = vmatprep.subr.bf16.mxu1 %v3550_v38 }
 0x443   :  { %1812 = vmatpush1.bf16.msra.mxu0 %v3535_v34  ;;  %1853 = vmatpush1.bf16.msra.mxu1 %v3545_v37 }
 0x444   :  { %1813 = vmatprep.subr.bf16.mxu0 %v3555_v39  ;;  %1854 = vmatprep.subr.bf16.mxu1 %v3561_v40 }
 0x447   :  { %1814 = vmatpush1.bf16.msra.mxu0 %v3568_v41  ;;  %1855 = vmatpush1.bf16.msra.mxu1 %v3575_v42 }
 0x448   :  { %1815 = vmatprep.subr.bf16.mxu0 %v3580_v43  ;;  %1856 = vmatprep.subr.bf16.mxu1 %v3586_v44 }
 0x44b   :  { %1816 = vmatpush1.bf16.msra.mxu0 %v3592_v2  ;;  %1857 = vmatpush1.bf16.msra.mxu1 %v3599_v3 }
 0x44c   :  { %1817 = vmatprep.subr.bf16.mxu0 %v3604_v4  ;;  %1858 = vmatprep.subr.bf16.mxu1 %v3610_v5 }
 0x44f   :  { %1818 = vmatpush1.bf16.msra.mxu0 %v3616_v7  ;;  %1859 = vmatpush1.bf16.msra.mxu1 %v3623_v8 }
 0x450   :  { %2120 = vmatprep.subr.bf16.mxu0 %v3439_v0  ;;  %2161 = vmatprep.subr.bf16.mxu1 %v3444_v51 }
 0x505   :  { %v1520_v18 = vpop.f32.mrb[16].mxu0  ;;  %v1561_v19 = vpop.f32.mrb[16].mxu1 }
 0x506   :  { %v1568_v20 = vadd.f32 %v1520_v18, %v1289_v16  ;;  %v1522_v22 = vpop.f32.mrb[17].mxu0  ;;  %v1563_v23 = vpop.f32.mrb[17].mxu1  ;;  %v1570_v47 = vadd.f32 %v1561_v19, %v1291_v35 }
 0x507   :  { %v1569_v24 = vadd.f32 %v1522_v22, %v1290_v17  ;;  %v1524_v25 = vpop.f32.mrb[18].mxu0  ;;  %v1565_v26 = vpop.f32.mrb[18].mxu1  ;;  %v1571_v32 = vadd.f32 %v1563_v23, %v1292_v31 }
 0x508   :  { %v2739_v27 = vmul.f32 -1.442695, %v1568_v20  ;;  %v1525_v28 = vpop.f32.mrb[19].mxu0  ;;  %v1566_v29 = vpop.f32.mrb[19].mxu1 }
 0x509   :  { %v2740_v30 = vmul.f32 -1.442695, %v1569_v24  ;;  %v2741_v45 = vmul.f32 -1.442695, %v1571_v32 }
 0x50a   :  { %3019 = vpow2.f32 %v2739_v27  ;;  %v2744_v27 = vld [vmem:[%s3789_s0 + $0x58] sm:$0xff] }
 0x50b   :  { %3021 = vpow2.f32 %v2740_v30 }
 0x50c   :  { %3023 = vpow2.f32 %v2741_v45 }
 0x50d   :  { %3025 = vtanh.f32 %v1570_v47  ;;  %v1609_v47 = vunpack.c.h.bf16 %v2744_v27 }
 0x514   :  { %v3020_v48 = vpop.eup %3019 }
 0x515   :  { %v3022_v49 = vpop.eup %3021  ;;  %v1575_v50 = vadd.f32 1.0, %v3020_v48 }
 0x516   :  { %v1581_v9 = vadd.f32 1.0, %v3022_v49  ;;  %v3024_v10 = vpop.eup %3023  ;;  %v1608_v49 = vunpack.c.l.bf16 %v2744_v27 }
 0x517   :  { %3027 = vrcp.f32 %v1575_v50  ;;  %v3026_v12 = vpop.eup %3025  ;;  %v1588_v46 = vadd.f32 1.0, %v3024_v10 }
 0x518   :  { %3029 = vrcp.f32 %v1581_v9 }
 0x519   :  { %3031 = vrcp.f32 %v1588_v46 }
 0x521   :  { %v3028_v13 = vpop.eup %3027 }
 0x522   :  { %v3030_v14 = vpop.eup %3029  ;;  %v1592_v15 = vmul.f32 %v3028_v13, %v3026_v12 }
 0x523   :  { %v1591_v16 = vmul.f32 %v3030_v14, %v3637_v11  ;;  %v3032_v18 = vpop.eup %3031  ;;  %v2743_v11 = vld [vmem:[%s3789_s0 + $0x50] sm:$0xff] }
 0x524   :  { %v1606_v22 = vunpack.c.l.bf16 %v2743_v11  ;;  %v1607_v23 = vunpack.c.h.bf16 %v2743_v11 }
 0x525   :  { %v3684_v17 = vadd.f32 %v1592_v15, %v1591_v16 }
 0x527   :  { %3033 = vtanh.f32 %v3684_v17 }
 0x531   :  { %v3034_v19 = vpop.eup %3033 }
 0x532   :  { %v1595_v20 = vmul.f32 %v3034_v19, %v3032_v18 }
 0x534   :  { %v1598_v21 = vpack.c.bf16 %v1595_v20, %v1595_v20 }
 0x536   :  { %2742 = vst [vmem:[%s3790_s2 + $0x10] sm:$0xf] %v1598_v21  ;;  %1836 = vmatmul.mubr.bf16.vlgmr.msra.gmra.mrb[20].mxu0 %v1598_v21  ;;  %1877 = vmatmul.mubr.bf16.vlgmr.msra.gmra.mrb[20].mxu1 %v1598_v21 }
 0x537   :  { %2121 = vmatpush1.bf16.msra.mxu0 %v3449_v6  ;;  %2162 = vmatpush1.bf16.msra.mxu1 %v3454_v52 }
 0x538   :  { %2122 = vmatprep.subr.bf16.mxu0 %v3463_v53  ;;  %2163 = vmatprep.subr.bf16.mxu1 %v3468_v54 }
 0x539   :  { %2152 = vmatprep.mubr.bf16.mxu0 %v3083_v1  ;;  %2193 = vmatprep.mubr.bf16.mxu1 %v3083_v1 }
 0x53b   :  { %2123 = vmatpush1.bf16.msra.mxu0 %v3473_v55  ;;  %2164 = vmatpush1.bf16.msra.mxu1 %v3478_v56 }
 0x53c   :  { %2124 = vmatprep.subr.bf16.mxu0 %v3487_v57  ;;  %2165 = vmatprep.subr.bf16.mxu1 %v3492_v58 }
 0x53f   :  { %2125 = vmatpush1.bf16.msra.mxu0 %v3497_v59  ;;  %2166 = vmatpush1.bf16.msra.mxu1 %v3502_v60 }
 0x540   :  { %2126 = vmatprep.subr.bf16.mxu0 %v3511_v61  ;;  %2167 = vmatprep.subr.bf16.mxu1 %v3516_v62 }
 0x543   :  { %2127 = vmatpush1.bf16.msra.mxu0 %v3521_v63  ;;  %2168 = vmatpush1.bf16.msra.mxu1 %v3526_v33 }
 0x544   :  { %2128 = vmatprep.subr.bf16.mxu0 %v3540_v36  ;;  %2169 = vmatprep.subr.bf16.mxu1 %v3550_v38 }
 0x547   :  { %2129 = vmatpush1.bf16.msra.mxu0 %v3535_v34  ;;  %2170 = vmatpush1.bf16.msra.mxu1 %v3545_v37 }
 0x548   :  { %2130 = vmatprep.subr.bf16.mxu0 %v3555_v39  ;;  %2171 = vmatprep.subr.bf16.mxu1 %v3561_v40 }
 0x54b   :  { %2131 = vmatpush1.bf16.msra.mxu0 %v3568_v41  ;;  %2172 = vmatpush1.bf16.msra.mxu1 %v3575_v42 }
 0x54c   :  { %2132 = vmatprep.subr.bf16.mxu0 %v3580_v43  ;;  %2173 = vmatprep.subr.bf16.mxu1 %v3586_v44 }
 0x54f   :  { %2133 = vmatpush1.bf16.msra.mxu0 %v3592_v2  ;;  %2174 = vmatpush1.bf16.msra.mxu1 %v3599_v3 }
 0x550   :  { %2134 = vmatprep.subr.bf16.mxu0 %v3604_v4  ;;  %2175 = vmatprep.subr.bf16.mxu1 %v3610_v5 }
 0x553   :  { %2135 = vmatpush1.bf16.msra.mxu0 %v3616_v7  ;;  %2176 = vmatpush1.bf16.msra.mxu1 %v3623_v8 }
 0x554   :  { %2437 = vmatprep.subr.bf16.mxu0 %v3439_v0  ;;  %2478 = vmatprep.subr.bf16.mxu1 %v3444_v51 }
 0x609   :  { %v1837_v24 = vpop.f32.mrb[20].mxu0  ;;  %v1878_v25 = vpop.f32.mrb[20].mxu1 }
 0x60a   :  { %v1885_v26 = vadd.f32 %v1837_v24, %v1606_v22  ;;  %v1839_v28 = vpop.f32.mrb[21].mxu0  ;;  %v1880_v29 = vpop.f32.mrb[21].mxu1  ;;  %v1887_v9 = vadd.f32 %v1878_v25, %v1608_v49 }
 0x60b   :  { %v1886_v30 = vadd.f32 %v1839_v28, %v1607_v23  ;;  %v1841_v31 = vpop.f32.mrb[22].mxu0  ;;  %v1882_v0 = vpop.f32.mrb[22].mxu1  ;;  %v1888_v48 = vadd.f32 %v1880_v29, %v1609_v47  ;;  %v2820_v47 = vld [vmem:[%s3789_s0 + $0x78] sm:$0xff] }
 0x60c   :  { %v2777_v32 = vmul.f32 -1.442695, %v1885_v26  ;;  %v1842_v51 = vpop.f32.mrb[23].mxu0  ;;  %v1883_v35 = vpop.f32.mrb[23].mxu1  ;;  %v2819_v31 = vld [vmem:[%s3789_s0 + $0x70] sm:$0xff] }
 0x60d   :  { %v2778_v45 = vmul.f32 -1.442695, %v1886_v30  ;;  %v2779_v50 = vmul.f32 -1.442695, %v1888_v48  ;;  %v2240_v0 = vunpack.c.l.bf16 %v2819_v31 }
 0x60e   :  { %3035 = vpow2.f32 %v2777_v32  ;;  %v2241_v32 = vunpack.c.h.bf16 %v2819_v31 }
 0x60f   :  { %3037 = vpow2.f32 %v2778_v45 }
 0x610   :  { %3039 = vpow2.f32 %v2779_v50 }
 0x611   :  { %3041 = vtanh.f32 %v1887_v9 }
 0x618   :  { %v3036_v10 = vpop.eup %3035 }
 0x619   :  { %v3038_v12 = vpop.eup %3037  ;;  %v1892_v13 = vadd.f32 1.0, %v3036_v10 }
 0x61a   :  { %v1898_v14 = vadd.f32 1.0, %v3038_v12  ;;  %v3040_v15 = vpop.eup %3039 }
 0x61b   :  { %3043 = vrcp.f32 %v1892_v13  ;;  %v3042_v46 = vpop.eup %3041  ;;  %v1905_v20 = vadd.f32 1.0, %v3040_v15 }
 0x61c   :  { %3045 = vrcp.f32 %v1898_v14 }
 0x61d   :  { %3047 = vrcp.f32 %v1905_v20 }
 0x625   :  { %v3044_v16 = vpop.eup %3043 }
 0x626   :  { %v3046_v18 = vpop.eup %3045  ;;  %v1909_v19 = vmul.f32 %v3044_v16, %v3042_v46  ;;  %v2243_v46 = vunpack.c.h.bf16 %v2820_v47 }
 0x627   :  { %v1908_v21 = vmul.f32 %v3046_v18, %v3684_v17  ;;  %v3048_v22 = vpop.eup %3047  ;;  %v2242_v18 = vunpack.c.l.bf16 %v2820_v47 }
 0x629   :  { %v3731_v11 = vadd.f32 %v1909_v19, %v1908_v21 }
 0x62b   :  { %3049 = vtanh.f32 %v3731_v11 }
 0x635   :  { %v3050_v23 = vpop.eup %3049 }
 0x636   :  { %v1912_v24 = vmul.f32 %v3050_v23, %v3048_v22 }
 0x638   :  { %v1915_v25 = vpack.c.bf16 %v1912_v24, %v1912_v24 }
 0x63a   :  { %2780 = vst [vmem:[%s3790_s2 + $0x14] sm:$0xf] %v1915_v25  ;;  %2153 = vmatmul.mubr.bf16.vlgmr.msra.gmra.mrb[24].mxu0 %v1915_v25  ;;  %2194 = vmatmul.mubr.bf16.vlgmr.msra.gmra.mrb[24].mxu1 %v1915_v25 }
 0x63b   :  { %2438 = vmatpush1.bf16.msra.mxu0 %v3449_v6  ;;  %2479 = vmatpush1.bf16.msra.mxu1 %v3454_v52 }
 0x63c   :  { %2439 = vmatprep.subr.bf16.mxu0 %v3463_v53  ;;  %2480 = vmatprep.subr.bf16.mxu1 %v3468_v54 }
 0x63d   :  { %2469 = vmatprep.mubr.bf16.mxu0 %v3083_v1  ;;  %2510 = vmatprep.mubr.bf16.mxu1 %v3083_v1  ;;  %v2781_v1 = vld [vmem:[%s3789_s0 + $0x60] sm:$0xff] }
 0x63e   :  { %v1923_v6 = vunpack.c.l.bf16 %v2781_v1  ;;  %v1924_v52 = vunpack.c.h.bf16 %v2781_v1 }
 0x63f   :  { %2440 = vmatpush1.bf16.msra.mxu0 %v3473_v55  ;;  %2481 = vmatpush1.bf16.msra.mxu1 %v3478_v56  ;;  %v2782_v56 = vld [vmem:[%s3789_s0 + $0x68] sm:$0xff] }
 0x640   :  { %2441 = vmatprep.subr.bf16.mxu0 %v3487_v57  ;;  %2482 = vmatprep.subr.bf16.mxu1 %v3492_v58 }
 0x643   :  { %2442 = vmatpush1.bf16.msra.mxu0 %v3497_v59  ;;  %2483 = vmatpush1.bf16.msra.mxu1 %v3502_v60 }
 0x644   :  { %2443 = vmatprep.subr.bf16.mxu0 %v3511_v61  ;;  %2484 = vmatprep.subr.bf16.mxu1 %v3516_v62 }
 0x647   :  { %2444 = vmatpush1.bf16.msra.mxu0 %v3521_v63  ;;  %2485 = vmatpush1.bf16.msra.mxu1 %v3526_v33 }
 0x648   :  { %2445 = vmatprep.subr.bf16.mxu0 %v3540_v36  ;;  %2486 = vmatprep.subr.bf16.mxu1 %v3550_v38  ;;  %v1926_v36 = vunpack.c.h.bf16 %v2782_v56  ;;  %v1925_v38 = vunpack.c.l.bf16 %v2782_v56 }
 0x64b   :  { %2446 = vmatpush1.bf16.msra.mxu0 %v3535_v34  ;;  %2487 = vmatpush1.bf16.msra.mxu1 %v3545_v37 }
 0x64c   :  { %2447 = vmatprep.subr.bf16.mxu0 %v3555_v39  ;;  %2488 = vmatprep.subr.bf16.mxu1 %v3561_v40 }
 0x64f   :  { %2448 = vmatpush1.bf16.msra.mxu0 %v3568_v41  ;;  %2489 = vmatpush1.bf16.msra.mxu1 %v3575_v42 }
 0x650   :  { %2449 = vmatprep.subr.bf16.mxu0 %v3580_v43  ;;  %2490 = vmatprep.subr.bf16.mxu1 %v3586_v44 }
 0x653   :  { %2450 = vmatpush1.bf16.msra.mxu0 %v3592_v2  ;;  %2491 = vmatpush1.bf16.msra.mxu1 %v3599_v3 }
 0x654   :  { %2451 = vmatprep.subr.bf16.mxu0 %v3604_v4  ;;  %2492 = vmatprep.subr.bf16.mxu1 %v3610_v5 }
 0x657   :  { %2452 = vmatpush1.bf16.msra.mxu0 %v3616_v7  ;;  %2493 = vmatpush1.bf16.msra.mxu1 %v3623_v8 }
 0x70d   :  { %v2154_v53 = vpop.f32.mrb[24].mxu0  ;;  %v2195_v54 = vpop.f32.mrb[24].mxu1 }
 0x70e   :  { %v2202_v55 = vadd.f32 %v2154_v53, %v1923_v6  ;;  %v2156_v57 = vpop.f32.mrb[25].mxu0  ;;  %v2197_v58 = vpop.f32.mrb[25].mxu1  ;;  %v2204_v40 = vadd.f32 %v2195_v54, %v1925_v38 }
 0x70f   :  { %v2203_v59 = vadd.f32 %v2156_v57, %v1924_v52  ;;  %v2158_v60 = vpop.f32.mrb[26].mxu0  ;;  %v2199_v61 = vpop.f32.mrb[26].mxu1  ;;  %v2205_v37 = vadd.f32 %v2197_v58, %v1926_v36 }
 0x710   :  { %v2815_v62 = vmul.f32 -1.442695, %v2202_v55  ;;  %v2159_v63 = vpop.f32.mrb[27].mxu0  ;;  %v2200_v33 = vpop.f32.mrb[27].mxu1 }
 0x711   :  { %v2816_v34 = vmul.f32 -1.442695, %v2203_v59  ;;  %v2817_v39 = vmul.f32 -1.442695, %v2205_v37 }
 0x712   :  { %3051 = vpow2.f32 %v2815_v62 }
 0x713   :  { %3053 = vpow2.f32 %v2816_v34 }
 0x714   :  { %3055 = vpow2.f32 %v2817_v39 }
 0x715   :  { %3057 = vtanh.f32 %v2204_v40 }
 0x71c   :  { %v3052_v41 = vpop.eup %3051 }
 0x71d   :  { %v3054_v42 = vpop.eup %3053  ;;  %v2209_v43 = vadd.f32 1.0, %v3052_v41 }
 0x71e   :  { %v2215_v44 = vadd.f32 1.0, %v3054_v42  ;;  %v3056_v2 = vpop.eup %3055 }
 0x71f   :  { %3059 = vrcp.f32 %v2209_v43  ;;  %v3058_v3 = vpop.eup %3057  ;;  %v2222_v8 = vadd.f32 1.0, %v3056_v2 }
 0x720   :  { %3061 = vrcp.f32 %v2215_v44 }
 0x721   :  { %3063 = vrcp.f32 %v2222_v8 }
 0x729   :  { %v3060_v4 = vpop.eup %3059 }
 0x72a   :  { %v3062_v5 = vpop.eup %3061  ;;  %v2226_v7 = vmul.f32 %v3060_v4, %v3058_v3 }
 0x72b   :  { %v2225_v17 = vmul.f32 %v3062_v5, %v3731_v11  ;;  %v3064_v27 = vpop.eup %3063 }
 0x72d   :  { %v2227_v26 = vadd.f32 %v2226_v7, %v2225_v17 }
 0x72f   :  { %3065 = vtanh.f32 %v2227_v26 }
 0x739   :  { %v3066_v28 = vpop.eup %3065 }
 0x73a   :  { %v2229_v29 = vmul.f32 %v3066_v28, %v3064_v27 }
 0x73c   :  { %v2232_v30 = vpack.c.bf16 %v2229_v29, %v2229_v29 }
 0x73e   :  { %2818 = vst [vmem:[%s3790_s2 + $0x18] sm:$0xf] %v2232_v30  ;;  %2470 = vmatmul.mubr.bf16.vlgmr.msra.gmra.mrb[28].mxu0 %v2232_v30  ;;  %2511 = vmatmul.mubr.bf16.vlgmr.msra.gmra.mrb[28].mxu1 %v2232_v30 }
 0x811   :  { %v2471_v51 = vpop.f32.mrb[28].mxu0  ;;  %v2512_v35 = vpop.f32.mrb[28].mxu1 }
 0x812   :  { %v2519_v45 = vadd.f32 %v2471_v51, %v2240_v0  ;;  %v2473_v48 = vpop.f32.mrb[29].mxu0  ;;  %v2514_v49 = vpop.f32.mrb[29].mxu1  ;;  %v2521_v20 = vadd.f32 %v2512_v35, %v2242_v18 }
 0x813   :  { %v2520_v50 = vadd.f32 %v2473_v48, %v2241_v32  ;;  %v2475_v9 = vpop.f32.mrb[30].mxu0  ;;  %v2516_v10 = vpop.f32.mrb[30].mxu1  ;;  %v2522_v16 = vadd.f32 %v2514_v49, %v2243_v46 }
 0x814   :  { %v2853_v12 = vmul.f32 -1.442695, %v2519_v45  ;;  %v2476_v13 = vpop.f32.mrb[31].mxu0  ;;  %v2517_v14 = vpop.f32.mrb[31].mxu1 }
 0x815   :  { %v2854_v15 = vmul.f32 -1.442695, %v2520_v50  ;;  %v2855_v19 = vmul.f32 -1.442695, %v2522_v16 }
 0x816   :  { %3067 = vpow2.f32 %v2853_v12 }
 0x817   :  { %3069 = vpow2.f32 %v2854_v15 }
 0x818   :  { %3071 = vpow2.f32 %v2855_v19 }
 0x819   :  { %3073 = vtanh.f32 %v2521_v20 }
 0x820   :  { %v3068_v21 = vpop.eup %3067 }
 0x821   :  { %v3070_v11 = vpop.eup %3069  ;;  %v2526_v22 = vadd.f32 1.0, %v3068_v21 }
 0x822   :  { %v2532_v23 = vadd.f32 1.0, %v3070_v11  ;;  %v3072_v24 = vpop.eup %3071 }
 0x823   :  { %3075 = vrcp.f32 %v2526_v22  ;;  %v3074_v25 = vpop.eup %3073  ;;  %v2539_v53 = vadd.f32 1.0, %v3072_v24 }
 0x824   :  { %3077 = vrcp.f32 %v2532_v23 }
 0x825   :  { %3079 = vrcp.f32 %v2539_v53 }
 0x82d   :  { %v3076_v1 = vpop.eup %3075 }
 0x82e   :  { %v3078_v6 = vpop.eup %3077  ;;  %v2543_v52 = vmul.f32 %v3076_v1, %v3074_v25 }
 0x82f   :  { %v2542_v54 = vmul.f32 %v3078_v6, %v2227_v26  ;;  %v3080_v56 = vpop.eup %3079 }
 0x831   :  { %v2544_v55 = vadd.f32 %v2543_v52, %v2542_v54 }
 0x833   :  { %3081 = vtanh.f32 %v2544_v55 }
 0x83d   :  { %v3082_v57 = vpop.eup %3081 }
 0x83e   :  { %v2546_v58 = vmul.f32 %v3082_v57, %v3080_v56 }
 0x840   :  { %v2549_v59 = vpack.c.bf16 %v2546_v58, %v2546_v58 }
 0x842   :  { %2856 = vst [vmem:[%s3790_s2 + $0x1c] sm:$0xf] %v2549_v59 }

</bundles_post_ra>
